<compile_context>
chip_gen: v7x
topology: tpu7x:2x2x1
jax: 0.10.0
libtpu: 0.0.40
codegen_flags: <defaults>
</compile_context>

<pallas_src>
import math

import jax
import jax.numpy as jnp
from jax.experimental import pallas as pl
from jax.experimental.pallas import tpu as pltpu


# ----------------------------------------------------------------------------
# Fused kernel: both GATConvs + star-graph attention + GRU cell for one block
# of BB independent windows.
# ----------------------------------------------------------------------------
def mtad_gat_kernel(x2_ref, xw_ref, wfc_ref, attn_ref, w_in_ref, wg0_ref,
                    whh_ref, bias_ref, h0_ref, out_ref):
    """Shapes (F = n_feats = n_window, N = F+1, H = F*F, BB = windows / block):
      x2_ref  : (N, BB, 2F)  node-major [zero-padded data | zero-padded data^T]
      xw_ref  : (BB, (N-1)*2F) same values for nodes>=1, window-major & lane-flat
      wfc_ref : (2F, 2F)     block-diag(Wf^T, Wt^T)     (both GAT fc weights)
      attn_ref: (2, 2F)      rows = [attn_l, attn_r] of both GATs
      w_in_ref: ((N-1)*2F, 3H) bf16  folded GRU weight for nodes >= 1
      wg0_ref : (2F, 3H)     f32    GRU weight rows acting on node 0's GAT out
      whh_ref : (H, 3H)      bf16   GRU W_hh^T
      bias_ref: (2, 3H)      rows = [b_ih + const GAT-bias terms, b_hh]
      h0_ref  : (BB, H)      previous hidden state
      out_ref : (BB, H)      new hidden state (lane dense)
    """
    x2 = x2_ref[...]                                     # (N, BB, 2F) f32
    n, bb, twof = x2.shape

    # ---- both GATConv fc projections: one (N*BB, 2F) x (2F, 2F) matmul ------
    # (BB is a multiple of 8, so this leading-dim merge/split is tile-aligned.)
    feat2 = jnp.dot(x2.reshape(n * bb, twof), wfc_ref[...],
                    preferred_element_type=jnp.float32)
    feat = feat2.reshape(n, bb, twof)                    # (N, BB, 2F)

    # ---- attention.  Graph = star (u->0) + self loops: only node 0 mixes its
    # in-edges, so only its row (row0) is attention-dependent.
    al = attn_ref[0:1, :].reshape(1, 1, twof)
    ar = attn_ref[1:2, :].reshape(1, 1, twof)
    e = feat * al + feat[0:1, :, :] * ar                 # e_l(src) + e_r(dst=0)
    e = jnp.where(e >= 0.0, e, 0.2 * e)                  # LeakyReLU(0.2)
    e_max = jnp.max(e, axis=0, keepdims=True)
    p = jnp.exp(e - e_max)
    denom = jnp.sum(p, axis=0, keepdims=True)
    alpha = p * pl.reciprocal(denom, approx=True)        # softmax over node axis
    row0 = jnp.sum(alpha * feat, axis=0)                 # (BB, 2F) node-0 GAT out (pre-bias)

    # ---- GRU input projection: two dense matmuls, M = BB ---------------------
    # Nodes >= 1 (GAT out == fc proj), the raw-data channel and all constant
    # gat-bias terms were folded host-side into w_in / bias_ref[0].
    xw = xw_ref[...].astype(jnp.bfloat16)                # (BB, (N-1)*2F)
    gi = jnp.dot(xw, w_in_ref[...], preferred_element_type=jnp.float32)
    gi = gi + jnp.dot(row0, wg0_ref[...], preferred_element_type=jnp.float32)
    gi = gi + bias_ref[0:1, :]                           # (BB, 3H) lane dense

    # ---- GRU cell (PyTorch gate order: reset, update, new) -------------------
    h0 = h0_ref[...]                                     # (BB, H) f32
    hid = h0.shape[1]
    gh = jnp.dot(h0.astype(jnp.bfloat16), whh_ref[...],
                 preferred_element_type=jnp.float32) + bias_ref[1:2, :]
    r = jax.nn.sigmoid(gi[:, 0:hid] + gh[:, 0:hid])
    z = jax.nn.sigmoid(gi[:, hid:2 * hid] + gh[:, hid:2 * hid])
    c = jnp.tanh(gi[:, 2 * hid:] + r * gh[:, 2 * hid:])
    out_ref[...] = (1.0 - z) * c + z * h0


# ----------------------------------------------------------------------------
# One-time host-side weight-layout plumbing (review item: do NOT redo per call).
# ----------------------------------------------------------------------------
def prepare_params(params):
    feats = params["wf"].shape[0]
    n = feats + 1
    hid = params["whh"].shape[1]

    # Both GAT fc weights as one block-diagonal matrix: x2 @ wfc = [xf@Wf^T | xt@Wt^T].
    wfc = jnp.zeros((2 * feats, 2 * feats), jnp.float32)
    wfc = wfc.at[:feats, :feats].set(params["wf"].T)
    wfc = wfc.at[feats:, feats:].set(params["wt"].T)

    attn = jnp.stack([
        jnp.concatenate([params["alf"], params["alt"]]),   # attn_l of both GATs
        jnp.concatenate([params["arf"], params["art"]]),   # attn_r of both GATs
    ]).astype(jnp.float32)                                 # (2, 2F)
    gb = jnp.concatenate([params["bf"], params["bt"]])     # GAT output biases (2F,)

    # GRU W_ih permuted to (node, channel, head, out):
    #   w4[o, i, j, c] = W_ih[o, i*3F + j*3 + c]   (torch interleaved layout)
    w4 = params["wih"].reshape(3 * hid, n, feats, 3)
    w3 = jnp.transpose(w4, (1, 3, 2, 0))                   # (N, 3, F, 3H)
    wd = w3[:, 0]                                          # data channel  (N, F, 3H)
    wg = jnp.concatenate([w3[:, 1], w3[:, 2]], axis=1)     # gat channels  (N, 2F, 3H)

    # Fold: for nodes i>=1, GAT output = x2[i] @ wfc + gb, so their GRU
    # contribution is x2[i] @ (wfc @ wg[i]) (+ data channel + constant terms).
    blocks = jnp.einsum('pm,imo->ipo', wfc, wg[1:])        # (N-1, 2F, 3H)
    blocks = blocks.at[:, :feats, :].add(wd[1:])           # + raw-data channel
    w_in = blocks.reshape((n - 1) * 2 * feats, 3 * hid)    # (512, 3H)
    wg0 = wg[0]                                            # node-0 (attention) weights
    b_eff = params["bih"] + gb @ jnp.sum(wg, axis=0)       # b_ih + all gb*wg terms
    bias = jnp.stack([b_eff, params["bhh"]]).astype(jnp.float32)   # (2, 3H)

    return dict(
        feats=feats, hid=hid,
        wfc=wfc, attn=attn,
        w_in=w_in.astype(jnp.bfloat16),     # bf16: halves dominant weight DMA
        wg0=wg0.astype(jnp.float32),
        whh_t=params["whh"].T.astype(jnp.bfloat16),
        bias=bias,
    )


# ----------------------------------------------------------------------------
# Batched forward: B independent windows, grid over batch blocks of size BB.
# ----------------------------------------------------------------------------
def mtad_gat_forward_batched(data_b, prep, hidden=None, block_b=8):
    feats, hid = prep["feats"], prep["hid"]
    n = feats + 1
    bb = block_b
    assert bb % 8 == 0, "batch block must be a multiple of 8 (sublane tiling)"

    data_b = jnp.asarray(data_b, jnp.float32).reshape(-1, feats, feats)
    b = data_b.shape[0]
    nblk = -(-b // bb)
    b_pad = nblk * bb

    # TODO(synk): the PyTorch forward overwrites a non-None `hidden` with
    # torch.rand(..., dtype=float64) (non-deterministic); we implement the
    # deterministic hidden=None path (zero initial state) / caller-provided h0.
    h0 = jnp.zeros((b_pad, hid), jnp.float32)
    if hidden is not None:
        h0 = h0.at[:b].set(jnp.asarray(hidden, jnp.float32).reshape(b, hid))
    if b_pad != b:
        data_b = jnp.concatenate(
            [data_b, jnp.zeros((b_pad - b, feats, feats), jnp.float32)], axis=0)

    # Node-major padded slab [data | data^T] for the GAT/attention path ...
    x2 = jnp.zeros((n, b_pad, 2 * feats), jnp.float32)
    x2 = x2.at[1:, :, :feats].set(jnp.transpose(data_b, (1, 0, 2)))
    x2 = x2.at[1:, :, feats:].set(jnp.transpose(data_b, (2, 0, 1)))
    # ... and the same values (nodes >= 1) window-major & lane-flat for the GRU.
    xw = jnp.transpose(x2[1:], (1, 0, 2)).reshape(b_pad, (n - 1) * 2 * feats)

    def full_spec(arr):
        nd = arr.ndim
        return pl.BlockSpec(arr.shape, lambda *_: (0,) * nd)   # weights: resident

    h_new = pl.pallas_call(
        mtad_gat_kernel,
        out_shape=jax.ShapeDtypeStruct((b_pad, hid), jnp.float32),
        grid=(nblk,),
        in_specs=[
            pl.BlockSpec((n, bb, 2 * feats), lambda g: (0, g, 0)),        # x2 stream
            pl.BlockSpec((bb, (n - 1) * 2 * feats), lambda g: (g, 0)),    # xw stream
            full_spec(prep["wfc"]),
            full_spec(prep["attn"]),
            full_spec(prep["w_in"]),
            full_spec(prep["wg0"]),
            full_spec(prep["whh_t"]),
            full_spec(prep["bias"]),
            pl.BlockSpec((bb, hid), lambda g: (g, 0)),                    # h0 stream
        ],
        out_specs=pl.BlockSpec((bb, hid), lambda g: (g, 0)),
        compiler_params=pltpu.CompilerParams(
            dimension_semantics=("parallel",)),
    )(x2, xw, prep["wfc"], prep["attn"], prep["w_in"], prep["wg0"],
      prep["whh_t"], prep["bias"], h0)
    return h_new[:b]


def mtad_gat_forward(data, prep, hidden=None):
    """PyTorch-shaped single-window forward: returns (x (H,), h (1, 1, H))."""
    hid = prep["hid"]
    h_new = mtad_gat_forward_batched(data, prep, hidden=hidden, block_b=8)
    return h_new[0], h_new.reshape(1, 1, hid)


# ----------------------------------------------------------------------------
# Deterministic torch-shaped parameters.
# ----------------------------------------------------------------------------
def init_params(key, feats):
    n = feats + 1
    hid = feats * feats
    in_dim = n * feats * 3
    ks = jax.random.split(key, 12)
    s = 1.0 / math.sqrt(feats)
    sh = 1.0 / math.sqrt(hid)
    return dict(
        # GATConv(feats, 1, num_heads=feats): fc (heads*out, in), attn (heads,), bias (heads,)
        wf=s * jax.random.normal(ks[0], (feats, feats), jnp.float32),
        alf=s * jax.random.normal(ks[1], (feats,), jnp.float32),
        arf=s * jax.random.normal(ks[2], (feats,), jnp.float32),
        bf=0.1 * jax.random.normal(ks[3], (feats,), jnp.float32),
        wt=s * jax.random.normal(ks[4], (feats, feats), jnp.float32),
        alt=s * jax.random.normal(ks[5], (feats,), jnp.float32),
        art=s * jax.random.normal(ks[6], (feats,), jnp.float32),
        bt=0.1 * jax.random.normal(ks[7], (feats,), jnp.float32),
        # nn.GRU((feats+1)*feats*3, feats*feats, 1): torch-shaped weights
        wih=jax.random.uniform(ks[8], (3 * hid, in_dim), jnp.float32, -sh, sh),
        bih=jax.random.uniform(ks[9], (3 * hid,), jnp.float32, -sh, sh),
        whh=jax.random.uniform(ks[10], (3 * hid, hid), jnp.float32, -sh, sh),
        bhh=jax.random.uniform(ks[11], (3 * hid,), jnp.float32, -sh, sh),
    )


# ----------------------------------------------------------------------------
# Pure-JAX reference that mirrors the PyTorch forward exactly (interleaved GRU
# input, original torch weight layout) to validate the kernel's weight folding.
# ----------------------------------------------------------------------------
def ref_forward(data, params, hidden=None):
    feats = params["wf"].shape[0]
    hid = params["whh"].shape[1]
    data = data.reshape(feats, feats).astype(jnp.float32)
    zrow = jnp.zeros((1, feats), jnp.float32)
    data_r = jnp.concatenate([zrow, data], axis=0)
    data_t = jnp.concatenate([zrow, data.T], axis=0)

    def gat(h, w, al, ar, b):
        feat = h @ w.T                                  # (F+1, F): heads, out_feats=1
        el = feat * al[None, :]
        er = feat * ar[None, :]
        e = jax.nn.leaky_relu(el + er[0:1, :], negative_slope=0.2)
        alpha = jax.nn.softmax(e, axis=0)               # softmax over node-0 in-edges
        out0 = jnp.sum(alpha * feat, axis=0, keepdims=True)
        return jnp.concatenate([out0, feat[1:, :]], axis=0) + b[None, :]

    feat_r = gat(data_r, params["wf"], params["alf"], params["arf"], params["bf"])
    time_r = gat(data_t, params["wt"], params["alt"], params["art"], params["bt"])

    x = jnp.stack([data_r, feat_r, time_r], axis=2).reshape(-1)  # torch cat(dim=2).view(-1)
    h0 = (jnp.zeros((hid,), jnp.float32) if hidden is None
          else jnp.asarray(hidden, jnp.float32).reshape(hid))
    gi = params["wih"] @ x + params["bih"]
    gh = params["whh"] @ h0 + params["bhh"]
    r = jax.nn.sigmoid(gi[:hid] + gh[:hid])
    z = jax.nn.sigmoid(gi[hid:2 * hid] + gh[hid:2 * hid])
    n = jnp.tanh(gi[2 * hid:] + r * gh[2 * hid:])
    h_new = (1.0 - z) * n + z * h0
    return h_new, h_new.reshape(1, 1, hid)


# ----------------------------------------------------------------------------
if __name__ == "__main__":
    feats = 16                       # n_feats == n_window == 16, hidden = 256
    key = jax.random.PRNGKey(0)
    kp, kd, kb = jax.random.split(key, 3)

    params = init_params(kp, feats)
    prep = prepare_params(params)    # one-time layout plumbing (not per call)

    # -- single window (PyTorch-shaped forward) -------------------------------
    data = jax.random.normal(kd, (feats, feats), dtype=jnp.float32)
    fwd = jax.jit(lambda d: mtad_gat_forward(d, prep))
    x_out, h_out = jax.block_until_ready(fwd(data))
    assert x_out.shape == (feats * feats,), x_out.shape
    assert h_out.shape == (1, 1, feats * feats), h_out.shape
    x_ref, _ = ref_forward(data, params)
    err1 = float(jnp.max(jnp.abs(x_out - x_ref)))

    # -- batch of independent windows (weights stay VMEM-resident over grid) --
    B = 12
    batch = jax.random.normal(kb, (B, feats, feats), dtype=jnp.float32)
    fwd_b = jax.jit(lambda d: mtad_gat_forward_batched(d, prep, block_b=8))
    h_b = jax.block_until_ready(fwd_b(batch))
    assert h_b.shape == (B, feats * feats), h_b.shape
    ref_b = jnp.stack([ref_forward(batch[i], params)[0] for i in range(B)])
    err2 = float(jnp.max(jnp.abs(h_b - ref_b)))

    # Tolerance is relaxed (bf16 GRU weights, approx softmax reciprocal).
    assert err1 < 5e-2, f"single-window mismatch vs reference: {err1}"
    assert err2 < 5e-2, f"batched mismatch vs reference: {err2}"

    print("KERNEL_OK")
</pallas_src>

<mosaic_0001>
module attributes {stable_mosaic.version = 11 : i64} {
  func.func @mtad_gat_kernel(%arg0: i32, %arg1: memref<17x8x32xf32, #tpu.memory_space<vmem>>, %arg2: memref<8x512xf32, #tpu.memory_space<vmem>>, %arg3: memref<32x32xf32, #tpu.memory_space<vmem>>, %arg4: memref<2x32xf32, #tpu.memory_space<vmem>>, %arg5: memref<512x768xbf16, #tpu.memory_space<vmem>>, %arg6: memref<32x768xf32, #tpu.memory_space<vmem>>, %arg7: memref<256x768xbf16, #tpu.memory_space<vmem>>, %arg8: memref<2x768xf32, #tpu.memory_space<vmem>>, %arg9: memref<8x256xf32, #tpu.memory_space<vmem>>, %arg10: memref<8x256xf32, #tpu.memory_space<vmem>>) attributes {dimension_semantics = [#tpu.dimension_semantics<parallel>], iteration_bounds = array<i64: 1>, scalar_prefetch = 0 : i64, scratch_operands = 0 : i64, tpu.core_type = #tpu.core_type<tc>, window_params = [{transform_indices = @transform_0, window_bounds = array<i64: 17, 8, 32>}, {transform_indices = @transform_1, window_bounds = array<i64: 8, 512>}, {pipeline_mode = #tpu.pipeline_mode<synchronous>, transform_indices = @transform_2, window_bounds = array<i64: 32, 32>}, {pipeline_mode = #tpu.pipeline_mode<synchronous>, transform_indices = @transform_3, window_bounds = array<i64: 2, 32>}, {pipeline_mode = #tpu.pipeline_mode<synchronous>, transform_indices = @transform_4, window_bounds = array<i64: 512, 768>}, {pipeline_mode = #tpu.pipeline_mode<synchronous>, transform_indices = @transform_5, window_bounds = array<i64: 32, 768>}, {pipeline_mode = #tpu.pipeline_mode<synchronous>, transform_indices = @transform_6, window_bounds = array<i64: 256, 768>}, {pipeline_mode = #tpu.pipeline_mode<synchronous>, transform_indices = @transform_7, window_bounds = array<i64: 2, 768>}, {transform_indices = @transform_8, window_bounds = array<i64: 8, 256>}, {transform_indices = @transform_9, window_bounds = array<i64: 8, 256>}]} {
    %c0 = arith.constant 0 : index
    %c0_0 = arith.constant 0 : index
    %c0_1 = arith.constant 0 : index
    %0 = vector.load %arg1[%c0, %c0_0, %c0_1] : memref<17x8x32xf32, #tpu.memory_space<vmem>>, vector<17x8x32xf32>
    %1 = vector.shape_cast %0 : vector<17x8x32xf32> to vector<136x32xf32>
    %c0_2 = arith.constant 0 : index
    %c0_3 = arith.constant 0 : index
    %2 = vector.load %arg3[%c0_2, %c0_3] : memref<32x32xf32, #tpu.memory_space<vmem>>, vector<32x32xf32>
    %cst = arith.constant dense<0.000000e+00> : vector<136x32xf32>
    %3 = tpu.matmul %1, %2, %cst {dimension_numbers = #tpu.dot_dimension_numbers<[1], [0], [0], [1], [0, 0, 1, 1], [], []>} : vector<136x32xf32>, vector<32x32xf32>, vector<136x32xf32> -> vector<136x32xf32>
    %4 = vector.shape_cast %3 : vector<136x32xf32> to vector<17x8x32xf32>
    %c0_4 = arith.constant 0 : index
    %c0_5 = arith.constant 0 : index
    %5 = vector.load %arg4[%c0_4, %c0_5] : memref<2x32xf32, #tpu.memory_space<vmem>>, vector<1x32xf32>
    %6 = vector.shape_cast %5 : vector<1x32xf32> to vector<1x1x32xf32>
    %c1 = arith.constant 1 : index
    %c0_6 = arith.constant 0 : index
    %7 = vector.load %arg4[%c1, %c0_6] : memref<2x32xf32, #tpu.memory_space<vmem>>, vector<1x32xf32>
    %8 = vector.shape_cast %7 : vector<1x32xf32> to vector<1x1x32xf32>
    %9 = vector.broadcast %6 : vector<1x1x32xf32> to vector<17x8x32xf32>
    %10 = arith.mulf %4, %9 : vector<17x8x32xf32>
    %11 = vector.extract_strided_slice %4 {offsets = [0, 0, 0], sizes = [1, 8, 32], strides = [1, 1, 1]} : vector<17x8x32xf32> to vector<1x8x32xf32>
    %12 = vector.broadcast %8 : vector<1x1x32xf32> to vector<1x8x32xf32>
    %13 = arith.mulf %11, %12 : vector<1x8x32xf32>
    %14 = vector.broadcast %13 : vector<1x8x32xf32> to vector<17x8x32xf32>
    %15 = arith.addf %10, %14 : vector<17x8x32xf32>
    %cst_7 = arith.constant 0.000000e+00 : f32
    %16 = vector.broadcast %cst_7 : f32 to vector<17x8x32xf32>
    %17 = arith.cmpf oge, %15, %16 : vector<17x8x32xf32>
    %cst_8 = arith.constant 2.000000e-01 : f32
    %18 = vector.broadcast %cst_8 : f32 to vector<17x8x32xf32>
    %19 = arith.mulf %18, %15 : vector<17x8x32xf32>
    %20 = arith.select %17, %15, %19 : vector<17x8x32xi1>, vector<17x8x32xf32>
    %cst_9 = arith.constant dense<0xFF800000> : vector<8x32xf32>
    %21 = vector.multi_reduction <maximumf>, %20, %cst_9 [0] : vector<17x8x32xf32> to vector<8x32xf32>
    %22 = vector.shape_cast %21 : vector<8x32xf32> to vector<1x8x32xf32>
    %23 = vector.broadcast %22 : vector<1x8x32xf32> to vector<17x8x32xf32>
    %24 = arith.subf %20, %23 : vector<17x8x32xf32>
    %25 = math.exp %24 : vector<17x8x32xf32>
    %cst_10 = arith.constant dense<0.000000e+00> : vector<8x32xf32>
    %26 = vector.multi_reduction <add>, %25, %cst_10 [0] : vector<17x8x32xf32> to vector<8x32xf32>
    %27 = vector.shape_cast %26 : vector<8x32xf32> to vector<1x8x32xf32>
    %28 = tpu.reciprocal %27 {approx = true} : vector<1x8x32xf32> -> vector<1x8x32xf32>
    %29 = vector.broadcast %28 : vector<1x8x32xf32> to vector<17x8x32xf32>
    %30 = arith.mulf %25, %29 : vector<17x8x32xf32>
    %31 = arith.mulf %30, %4 : vector<17x8x32xf32>
    %cst_11 = arith.constant dense<0.000000e+00> : vector<8x32xf32>
    %32 = vector.multi_reduction <add>, %31, %cst_11 [0] : vector<17x8x32xf32> to vector<8x32xf32>
    %c0_12 = arith.constant 0 : index
    %c0_13 = arith.constant 0 : index
    %33 = vector.load %arg2[%c0_12, %c0_13] : memref<8x512xf32, #tpu.memory_space<vmem>>, vector<8x512xf32>
    %34 = arith.truncf %33 : vector<8x512xf32> to vector<8x512xbf16>
    %c0_14 = arith.constant 0 : index
    %c0_15 = arith.constant 0 : index
    %35 = vector.load %arg5[%c0_14, %c0_15] : memref<512x768xbf16, #tpu.memory_space<vmem>>, vector<512x768xbf16>
    %cst_16 = arith.constant dense<0.000000e+00> : vector<8x768xf32>
    %36 = tpu.matmul %34, %35, %cst_16 {dimension_numbers = #tpu.dot_dimension_numbers<[1], [0], [0], [1], [0, 0, 1, 1], [], []>} : vector<8x512xbf16>, vector<512x768xbf16>, vector<8x768xf32> -> vector<8x768xf32>
    %c0_17 = arith.constant 0 : index
    %c0_18 = arith.constant 0 : index
    %37 = vector.load %arg6[%c0_17, %c0_18] : memref<32x768xf32, #tpu.memory_space<vmem>>, vector<32x768xf32>
    %cst_19 = arith.constant dense<0.000000e+00> : vector<8x768xf32>
    %38 = tpu.matmul %32, %37, %cst_19 {dimension_numbers = #tpu.dot_dimension_numbers<[1], [0], [0], [1], [0, 0, 1, 1], [], []>} : vector<8x32xf32>, vector<32x768xf32>, vector<8x768xf32> -> vector<8x768xf32>
    %39 = arith.addf %36, %38 : vector<8x768xf32>
    %c0_20 = arith.constant 0 : index
    %c0_21 = arith.constant 0 : index
    %40 = vector.load %arg8[%c0_20, %c0_21] : memref<2x768xf32, #tpu.memory_space<vmem>>, vector<1x768xf32>
    %41 = vector.broadcast %40 : vector<1x768xf32> to vector<8x768xf32>
    %42 = arith.addf %39, %41 : vector<8x768xf32>
    %c0_22 = arith.constant 0 : index
    %c0_23 = arith.constant 0 : index
    %43 = vector.load %arg9[%c0_22, %c0_23] : memref<8x256xf32, #tpu.memory_space<vmem>>, vector<8x256xf32>
    %44 = arith.truncf %43 : vector<8x256xf32> to vector<8x256xbf16>
    %c0_24 = arith.constant 0 : index
    %c0_25 = arith.constant 0 : index
    %45 = vector.load %arg7[%c0_24, %c0_25] : memref<256x768xbf16, #tpu.memory_space<vmem>>, vector<256x768xbf16>
    %cst_26 = arith.constant dense<0.000000e+00> : vector<8x768xf32>
    %46 = tpu.matmul %44, %45, %cst_26 {dimension_numbers = #tpu.dot_dimension_numbers<[1], [0], [0], [1], [0, 0, 1, 1], [], []>} : vector<8x256xbf16>, vector<256x768xbf16>, vector<8x768xf32> -> vector<8x768xf32>
    %c1_27 = arith.constant 1 : index
    %c0_28 = arith.constant 0 : index
    %47 = vector.load %arg8[%c1_27, %c0_28] : memref<2x768xf32, #tpu.memory_space<vmem>>, vector<1x768xf32>
    %48 = vector.broadcast %47 : vector<1x768xf32> to vector<8x768xf32>
    %49 = arith.addf %46, %48 : vector<8x768xf32>
    %50 = vector.extract_strided_slice %42 {offsets = [0, 0], sizes = [8, 256], strides = [1, 1]} : vector<8x768xf32> to vector<8x256xf32>
    %51 = vector.extract_strided_slice %49 {offsets = [0, 0], sizes = [8, 256], strides = [1, 1]} : vector<8x768xf32> to vector<8x256xf32>
    %52 = arith.addf %50, %51 : vector<8x256xf32>
    %53 = arith.negf %52 : vector<8x256xf32>
    %54 = math.exp %53 : vector<8x256xf32>
    %cst_29 = arith.constant 1.000000e+00 : f32
    %55 = vector.broadcast %cst_29 : f32 to vector<8x256xf32>
    %56 = arith.addf %55, %54 : vector<8x256xf32>
    %57 = arith.divf %55, %56 : vector<8x256xf32>
    %58 = vector.extract_strided_slice %42 {offsets = [0, 256], sizes = [8, 256], strides = [1, 1]} : vector<8x768xf32> to vector<8x256xf32>
    %59 = vector.extract_strided_slice %49 {offsets = [0, 256], sizes = [8, 256], strides = [1, 1]} : vector<8x768xf32> to vector<8x256xf32>
    %60 = arith.addf %58, %59 : vector<8x256xf32>
    %61 = arith.negf %60 : vector<8x256xf32>
    %62 = math.exp %61 : vector<8x256xf32>
    %cst_30 = arith.constant 1.000000e+00 : f32
    %63 = vector.broadcast %cst_30 : f32 to vector<8x256xf32>
    %64 = arith.addf %63, %62 : vector<8x256xf32>
    %65 = arith.divf %63, %64 : vector<8x256xf32>
    %66 = vector.extract_strided_slice %42 {offsets = [0, 512], sizes = [8, 256], strides = [1, 1]} : vector<8x768xf32> to vector<8x256xf32>
    %67 = vector.extract_strided_slice %49 {offsets = [0, 512], sizes = [8, 256], strides = [1, 1]} : vector<8x768xf32> to vector<8x256xf32>
    %68 = arith.mulf %57, %67 : vector<8x256xf32>
    %69 = arith.addf %66, %68 : vector<8x256xf32>
    %70 = math.tanh %69 : vector<8x256xf32>
    %cst_31 = arith.constant 1.000000e+00 : f32
    %71 = vector.broadcast %cst_31 : f32 to vector<8x256xf32>
    %72 = arith.subf %71, %65 : vector<8x256xf32>
    %73 = arith.mulf %72, %70 : vector<8x256xf32>
    %74 = arith.mulf %65, %43 : vector<8x256xf32>
    %75 = arith.addf %73, %74 : vector<8x256xf32>
    %c0_32 = arith.constant 0 : index
    %c0_33 = arith.constant 0 : index
    %76 = vector.load %arg10[%c0_32, %c0_33] : memref<8x256xf32, #tpu.memory_space<vmem>>, vector<8x256xf32>
    tpu.vector_store %arg10[%c0_32, %c0_33], %75 {strides = array<i32>} : memref<8x256xf32, #tpu.memory_space<vmem>>, vector<8x256xf32>,
    return
  }
  func.func @transform_0(%arg0: i32) -> (i32, i32, i32) {
    %c0_i32 = arith.constant 0 : i32
    %c0_i32_0 = arith.constant 0 : i32
    %c0_i32_1 = arith.constant 0 : i32
    return %c0_i32, %arg0, %c0_i32_0 : i32, i32, i32
  }
  func.func @transform_1(%arg0: i32) -> (i32, i32) {
    %c0_i32 = arith.constant 0 : i32
    %c0_i32_0 = arith.constant 0 : i32
    return %arg0, %c0_i32 : i32, i32
  }
  func.func @transform_2(%arg0: i32) -> (i32, i32) {
    %c0_i32 = arith.constant 0 : i32
    %c0_i32_0 = arith.constant 0 : i32
    %c0_i32_1 = arith.constant 0 : i32
    return %c0_i32, %c0_i32_0 : i32, i32
  }
  func.func @transform_3(%arg0: i32) -> (i32, i32) {
    %c0_i32 = arith.constant 0 : i32
    %c0_i32_0 = arith.constant 0 : i32
    %c0_i32_1 = arith.constant 0 : i32
    return %c0_i32, %c0_i32_0 : i32, i32
  }
  func.func @transform_4(%arg0: i32) -> (i32, i32) {
    %c0_i32 = arith.constant 0 : i32
    %c0_i32_0 = arith.constant 0 : i32
    %c0_i32_1 = arith.constant 0 : i32
    return %c0_i32, %c0_i32_0 : i32, i32
  }
  func.func @transform_5(%arg0: i32) -> (i32, i32) {
    %c0_i32 = arith.constant 0 : i32
    %c0_i32_0 = arith.constant 0 : i32
    %c0_i32_1 = arith.constant 0 : i32
    return %c0_i32, %c0_i32_0 : i32, i32
  }
  func.func @transform_6(%arg0: i32) -> (i32, i32) {
    %c0_i32 = arith.constant 0 : i32
    %c0_i32_0 = arith.constant 0 : i32
    %c0_i32_1 = arith.constant 0 : i32
    return %c0_i32, %c0_i32_0 : i32, i32
  }
  func.func @transform_7(%arg0: i32) -> (i32, i32) {
    %c0_i32 = arith.constant 0 : i32
    %c0_i32_0 = arith.constant 0 : i32
    %c0_i32_1 = arith.constant 0 : i32
    return %c0_i32, %c0_i32_0 : i32, i32
  }
  func.func @transform_8(%arg0: i32) -> (i32, i32) {
    %c0_i32 = arith.constant 0 : i32
    %c0_i32_0 = arith.constant 0 : i32
    return %arg0, %c0_i32 : i32, i32
  }
  func.func @transform_9(%arg0: i32) -> (i32, i32) {
    %c0_i32 = arith.constant 0 : i32
    %c0_i32_0 = arith.constant 0 : i32
    return %arg0, %c0_i32 : i32, i32
  }
}

</mosaic_0001>

<bundles_post_ra>
// kernel: _lambda_.1
= control target key start
LH: loop header
LB: loop body
LE: loop exit
PB: predicated region body
PF: predicated region fallthrough
CT: control target
= control target key end

     0   :  { %v3942_v0 = vmov 0.0|0.0   ;;  %vm3943_vm0 = vmmov 0   ;;  %v3944_v6 = vmov 0.0   ;;  %vm53_vm1 = vcmask 261120   ;;  %s5460_s2 = inlined_call_operand.vmem [shape: f32[32,32], index: 2, kind: input, shape index: {}]   ;;  %s5461_s0 = inlined_call_operand.vmem [shape: f32[17,8,32], index: 0, kind: input, shape index: {}]   ;;  %s5462_s4 = inlined_call_operand.vmem [shape: bf16[512,768], index: 4, kind: input, shape index: {}]   ;;  %s5463_s1 = inlined_call_operand.vmem [shape: f32[8,512], index: 1, kind: input, shape index: {}]   ;;  %s5464_s3 = inlined_call_operand.vmem [shape: f32[2,32], index: 3, kind: input, shape index: {}]   ;;  %s5465_s5 = inlined_call_operand.vmem [shape: f32[32,768], index: 5, kind: input, shape index: {}]   ;;  %s5466_s6 = inlined_call_operand.vmem [shape: bf16[256,768], index: 6, kind: input, shape index: {}]   ;;  %s5467_s8 = inlined_call_operand.vmem [shape: f32[8,256], index: 8, kind: input, shape index: {}]   ;;  %s5468_s7 = inlined_call_operand.vmem [shape: f32[2,768], index: 7, kind: input, shape index: {}]   ;;  %s5469_s9 = inlined_call_operand.vmem [shape: f32[8,256], index: 9, kind: output, shape index: {}]  }
   0x1   :  { %3399 = vmatprep.subr.bf16.mxu0 %v3942_v0  ;;  %3429 = vmatprep.subr.bf16.mxu1 %v3942_v0  ;;  %v49_v1 = vld [vmem:[%s5460_s2] sm:$0xff]  ;;  %v50_v2 = vld [vmem:[%s5460_s2 + $0x8] sm:$0xff]  ;;  %v51_v3 = vld [vmem:[%s5460_s2 + $0x10] sm:$0xff] }
   0x2   :  { %v3400_v4 = vpack.c.bf16 %v50_v2, %v49_v1  ;;  %v52_v5 = vld [vmem:[%s5460_s2 + $0x18] sm:$0xff]  ;;  %3348 = vmatprep.mubr.msk.f32.mxu0 %vm3943_vm0, %v3944_v6  ;;  %3396 = vmatprep.mubr.msk.f32.mxu1 %vm3943_vm0, %v3944_v6  ;;  %v32_v8 = vld [vmem:[%s5461_s0] sm:$0xff]  ;;  %v3459_v12 = vld [vmem:[%s5462_s4 + $0x34] ss:$24 sps:$4 sm:$0xff]  }
   0x3   :  { %v3403_v7 = vpack.c.bf16 %v52_v5, %v51_v3  ;;  %v48_v9 = vld [vmem:[%s5461_s0 + $0x80] sm:$0xff]  ;;  %v33_v13 = vld [vmem:[%s5461_s0 + $0x8] sm:$0xff]  ;;  %v34_v16 = vld [vmem:[%s5461_s0 + $0x10] sm:$0xff] }
   0x4   :  { %3401 = vmatpush3.bf16.msra.mxu0 %v3400_v4  ;;  %3431 = vmatpush3.bf16.msra.mxu1 %v3400_v4  ;;  %v3454_v10 = vld [vmem:[%s5462_s4] ss:$24 sps:$4 sm:$0xff]   ;;  %v3456_v11 = vld [vmem:[%s5462_s4 + $0x4] ss:$24 sps:$4 sm:$0xff]   ;;  %v3457_v14 = vld [vmem:[%s5462_s4 + $0x30] ss:$24 sps:$4 sm:$0xff]  }
   0x5   :  { %3402 = vmatprep.subr.bf16.mxu0 %v3942_v0  ;;  %3430 = vmatprep.subr.bf16.mxu1 %v3942_v0  ;;  %v3462_v15 = vld [vmem:[%s5462_s4 + $0x64] ss:$24 sps:$4 sm:$0xff]   ;;  %v3460_v17 = vld [vmem:[%s5462_s4 + $0x60] ss:$24 sps:$4 sm:$0xff]   ;;  %v3465_v18 = vld [vmem:[%s5462_s4 + $0x94] ss:$24 sps:$4 sm:$0xff]  }
   0x6   :  { %v35_v19 = vld [vmem:[%s5461_s0 + $0x18] sm:$0xff]  ;;  %v3463_v20 = vld [vmem:[%s5462_s4 + $0x90] ss:$24 sps:$4 sm:$0xff]   ;;  %v36_v22 = vld [vmem:[%s5461_s0 + $0x20] sm:$0xff] }
   0x7   :  { %v3468_v21 = vld [vmem:[%s5462_s4 + $0xc4] ss:$24 sps:$4 sm:$0xff]   ;;  %v3466_v23 = vld [vmem:[%s5462_s4 + $0xc0] ss:$24 sps:$4 sm:$0xff]   ;;  %v3471_v24 = vld [vmem:[%s5462_s4 + $0xf4] ss:$24 sps:$4 sm:$0xff]  }
   0x8   :  { %3404 = vmatpush3.bf16.msra.mxu0 %v3403_v7  ;;  %3432 = vmatpush3.bf16.msra.mxu1 %v3403_v7  ;;  %v37_v25 = vld [vmem:[%s5461_s0 + $0x28] sm:$0xff]  ;;  %v3474_v27 = vld [vmem:[%s5462_s4 + $0x124] ss:$24 sps:$4 sm:$0xff]   ;;  %v38_v28 = vld [vmem:[%s5461_s0 + $0x30] sm:$0xff] }
   0x9   :  { %1936 = vmatprep.subr.bf16.mxu0 %v3456_v11  ;;  %v3469_v26 = vld [vmem:[%s5462_s4 + $0xf0] ss:$24 sps:$4 sm:$0xff]   ;;  %v3472_v29 = vld [vmem:[%s5462_s4 + $0x120] ss:$24 sps:$4 sm:$0xff]   ;;  %v3477_v30 = vld [vmem:[%s5462_s4 + $0x154] ss:$24 sps:$4 sm:$0xff]  }
   0xa   :  { %v39_v31 = vld [vmem:[%s5461_s0 + $0x38] sm:$0xff]  ;;  %v3475_v32 = vld [vmem:[%s5462_s4 + $0x150] ss:$24 sps:$4 sm:$0xff]   ;;  %v40_v34 = vld [vmem:[%s5461_s0 + $0x40] sm:$0xff] }
   0xb   :  { %3349 = vmatmul.mubr.msk.f32.vlgmr.msra.gmra.mrb[0].mxu0 %vm53_vm1, %v32_v8  ;;  %3397 = vmatmul.mubr.msk.f32.vlgmr.msra.gmra.mrb[0].mxu1 %vm53_vm1, %v48_v9  ;;  %v3480_v33 = vld [vmem:[%s5462_s4 + $0x184] ss:$24 sps:$4 sm:$0xff]   ;;  %v3478_v35 = vld [vmem:[%s5462_s4 + $0x180] ss:$24 sps:$4 sm:$0xff]   ;;  %v3483_v36 = vld [vmem:[%s5462_s4 + $0x1b4] ss:$24 sps:$4 sm:$0xff]  }
   0xc   :  { %3351 = vmatprep.mubr.msk.f32.mxu0 %vm3943_vm0, %v3944_v6  ;;  %1937 = vmatpush1.bf16.msra.mxu0 %v3454_v10  ;;  %v41_v37 = vld [vmem:[%s5461_s0 + $0x48] sm:$0xff]  ;;  %v3486_v39 = vld [vmem:[%s5462_s4 + $0x1e4] ss:$24 sps:$4 sm:$0xff]   ;;  %v42_v40 = vld [vmem:[%s5461_s0 + $0x50] sm:$0xff] }
   0xd   :  { %827 = vmatprep.mubr.f32.mxu1 %v3944_v6  ;;  %1938 = vmatprep.subr.bf16.mxu0 %v3459_v12  ;;  %v3481_v38 = vld [vmem:[%s5462_s4 + $0x1b0] ss:$24 sps:$4 sm:$0xff]   ;;  %v3484_v41 = vld [vmem:[%s5462_s4 + $0x1e0] ss:$24 sps:$4 sm:$0xff]   ;;  %v3489_v42 = vld [vmem:[%s5462_s4 + $0x214] ss:$24 sps:$4 sm:$0xff]  }
   0xe   :  { %v43_v43 = vld [vmem:[%s5461_s0 + $0x58] sm:$0xff]  ;;  %v3487_v44 = vld [vmem:[%s5462_s4 + $0x210] ss:$24 sps:$4 sm:$0xff]   ;;  %v44_v46 = vld [vmem:[%s5461_s0 + $0x60] sm:$0xff] }
   0xf   :  { %3352 = vmatmul.mubr.msk.f32.gmra.mrb[2].mxu0 %vm53_vm1, %v33_v13  ;;  %v3492_v45 = vld [vmem:[%s5462_s4 + $0x244] ss:$24 sps:$4 sm:$0xff]   ;;  %v3490_v47 = vld [vmem:[%s5462_s4 + $0x240] ss:$24 sps:$4 sm:$0xff]   ;;  %v3495_v48 = vld [vmem:[%s5462_s4 + $0x274] ss:$24 sps:$4 sm:$0xff]  }
  0x10   :  { %3354 = vmatprep.mubr.msk.f32.mxu0 %vm3943_vm0, %v3944_v6  ;;  %1939 = vmatpush1.bf16.msra.mxu0 %v3457_v14  ;;  %v45_v49 = vld [vmem:[%s5461_s0 + $0x68] sm:$0xff]  ;;  %v3498_v51 = vld [vmem:[%s5462_s4 + $0x2a4] ss:$24 sps:$4 sm:$0xff]   ;;  %v46_v52 = vld [vmem:[%s5461_s0 + $0x70] sm:$0xff] }
  0x11   :  { %1940 = vmatprep.subr.bf16.mxu0 %v3462_v15  ;;  %v3493_v50 = vld [vmem:[%s5462_s4 + $0x270] ss:$24 sps:$4 sm:$0xff]   ;;  %v3496_v53 = vld [vmem:[%s5462_s4 + $0x2a0] ss:$24 sps:$4 sm:$0xff]   ;;  %v3501_v55 = vld [vmem:[%s5462_s4 + $0x2d4] ss:$24 sps:$4 sm:$0xff]  }
  0x12   :  { %v537_v54 = vld [vmem:[%s5463_s1 + $0x8] sm:$0xff]  ;;  %v47_v56 = vld [vmem:[%s5461_s0 + $0x78] sm:$0xff]  ;;  %v536_v58 = vld [vmem:[%s5463_s1] sm:$0xff] }
  0x13   :  { %3355 = vmatmul.mubr.msk.f32.gmra.mrb[4].mxu0 %vm53_vm1, %v34_v16  ;;  %v3499_v57 = vld [vmem:[%s5462_s4 + $0x2d0] ss:$24 sps:$4 sm:$0xff]   ;;  %v4211_v59 = vpack.c.bf16 %v537_v54, %v537_v54  ;;  %v3504_v60 = vld [vmem:[%s5462_s4 + $0x304] ss:$24 sps:$4 sm:$0xff]   ;;  %v3502_v61 = vld [vmem:[%s5462_s4 + $0x300] ss:$24 sps:$4 sm:$0xff]   ;;  %v4221_v62 = vpack.c.bf16 %v536_v58, %v536_v58 }
  0x14   :  { %3357 = vmatprep.mubr.msk.f32.mxu0 %vm3943_vm0, %v3944_v6  ;;  %1941 = vmatpush1.bf16.msra.mxu0 %v3460_v17  ;;  %v3507_v63 = vld [vmem:[%s5462_s4 + $0x334] ss:$24 sps:$4 sm:$0xff]   ;;  %v3505_v0 = vld [vmem:[%s5462_s4 + $0x330] ss:$24 sps:$4 sm:$0xff]   ;;  %v3510_v1 = vld [vmem:[%s5462_s4 + $0x364] ss:$24 sps:$4 sm:$0xff]  }
  0x15   :  { %1942 = vmatprep.subr.bf16.mxu0 %v3465_v18  ;;  %v3508_v2 = vld [vmem:[%s5462_s4 + $0x360] ss:$24 sps:$4 sm:$0xff]   ;;  %v3513_v3 = vld [vmem:[%s5462_s4 + $0x394] ss:$24 sps:$4 sm:$0xff]   ;;  %v3511_v4 = vld [vmem:[%s5462_s4 + $0x390] ss:$24 sps:$4 sm:$0xff]  }
  0x16   :  { %v3516_v5 = vld [vmem:[%s5462_s4 + $0x3c4] ss:$24 sps:$4 sm:$0xff]   ;;  %v3514_v7 = vld [vmem:[%s5462_s4 + $0x3c0] ss:$24 sps:$4 sm:$0xff]   ;;  %v3519_v8 = vld [vmem:[%s5462_s4 + $0x3f4] ss:$24 sps:$4 sm:$0xff]  }
  0x17   :  { %3358 = vmatmul.mubr.msk.f32.gmra.mrb[6].mxu0 %vm53_vm1, %v35_v19  ;;  %v3517_v9 = vld [vmem:[%s5462_s4 + $0x3f0] ss:$24 sps:$4 sm:$0xff]   ;;  %v3522_v10 = vld [vmem:[%s5462_s4 + $0x424] ss:$24 sps:$4 sm:$0xff]   ;;  %v3520_v11 = vld [vmem:[%s5462_s4 + $0x420] ss:$24 sps:$4 sm:$0xff]  }
  0x18   :  { %3360 = vmatprep.mubr.msk.f32.mxu0 %vm3943_vm0, %v3944_v6  ;;  %1943 = vmatpush1.bf16.msra.mxu0 %v3463_v20  ;;  %v3525_v12 = vld [vmem:[%s5462_s4 + $0x454] ss:$24 sps:$4 sm:$0xff]   ;;  %v3523_v13 = vld [vmem:[%s5462_s4 + $0x450] ss:$24 sps:$4 sm:$0xff]   ;;  %v3528_v14 = vld [vmem:[%s5462_s4 + $0x484] ss:$24 sps:$4 sm:$0xff]  }
  0x19   :  { %1944 = vmatprep.subr.bf16.mxu0 %v3468_v21  ;;  %v3526_v15 = vld [vmem:[%s5462_s4 + $0x480] ss:$24 sps:$4 sm:$0xff]   ;;  %v3531_v16 = vld [vmem:[%s5462_s4 + $0x4b4] ss:$24 sps:$4 sm:$0xff]   ;;  %v3529_v17 = vld [vmem:[%s5462_s4 + $0x4b0] ss:$24 sps:$4 sm:$0xff]  }
  0x1a   :  { %v3534_v18 = vld [vmem:[%s5462_s4 + $0x4e4] ss:$24 sps:$4 sm:$0xff]   ;;  %v3532_v19 = vld [vmem:[%s5462_s4 + $0x4e0] ss:$24 sps:$4 sm:$0xff]   ;;  %v3537_v20 = vld [vmem:[%s5462_s4 + $0x514] ss:$24 sps:$4 sm:$0xff]  }
  0x1b   :  { %3361 = vmatmul.mubr.msk.f32.gmra.mrb[8].mxu0 %vm53_vm1, %v36_v22  ;;  %v3535_v21 = vld [vmem:[%s5462_s4 + $0x510] ss:$24 sps:$4 sm:$0xff]   ;;  %v3540_v22 = vld [vmem:[%s5462_s4 + $0x544] ss:$24 sps:$4 sm:$0xff]  }
  0x1c   :  { %3363 = vmatprep.mubr.msk.f32.mxu0 %vm3943_vm0, %v3944_v6  ;;  %1945 = vmatpush1.bf16.msra.mxu0 %v3466_v23  ;;  %v3538_v23 = vld [vmem:[%s5462_s4 + $0x540] ss:$24 sps:$4 sm:$0xff]   ;;  %v3582_v54 = vld [vmem:[%s5462_s4 + $0x1ec] ss:$24 sps:$4 sm:$0xff]  }
  0x1d   :  { %1946 = vmatprep.subr.bf16.mxu0 %v3471_v24  ;;  %v3543_v24 = vld [vmem:[%s5462_s4 + $0x574] ss:$24 sps:$4 sm:$0xff]  }
  0x1e   :  { %v3588_v58 = vld [vmem:[%s5462_s4 + $0x24c] ss:$24 sps:$4 sm:$0xff]  }
  0x1f   :  { %3364 = vmatmul.mubr.msk.f32.gmra.mrb[10].mxu0 %vm53_vm1, %v37_v25  ;;  %v3541_v25 = vld [vmem:[%s5462_s4 + $0x570] ss:$24 sps:$4 sm:$0xff]  }
  0x20   :  { %3366 = vmatprep.mubr.msk.f32.mxu0 %vm3943_vm0, %v3944_v6  ;;  %1947 = vmatpush1.bf16.msra.mxu0 %v3469_v26  ;;  %v3546_v26 = vld [vmem:[%s5462_s4 + $0x5a4] ss:$24 sps:$4 sm:$0xff]  }
  0x21   :  { %1948 = vmatprep.subr.bf16.mxu0 %v3474_v27  ;;  %v3544_v27 = vld [vmem:[%s5462_s4 + $0x5a0] ss:$24 sps:$4 sm:$0xff]  }
  0x23   :  { %3367 = vmatmul.mubr.msk.f32.gmra.mrb[12].mxu0 %vm53_vm1, %v38_v28  ;;  %v3549_v28 = vld [vmem:[%s5462_s4 + $0x5d4] ss:$24 sps:$4 sm:$0xff]  }
  0x24   :  { %3369 = vmatprep.mubr.msk.f32.mxu0 %vm3943_vm0, %v3944_v6  ;;  %1949 = vmatpush1.bf16.msra.mxu0 %v3472_v29  ;;  %v3547_v29 = vld [vmem:[%s5462_s4 + $0x5d0] ss:$24 sps:$4 sm:$0xff]  }
  0x25   :  { %1950 = vmatprep.subr.bf16.mxu0 %v3477_v30  ;;  %v539_v30 = vld [vmem:[%s5463_s1 + $0x18] sm:$0xff] }
  0x27   :  { %3370 = vmatmul.mubr.msk.f32.gmra.mrb[14].mxu0 %vm53_vm1, %v39_v31  ;;  %v4317_v31 = vpack.c.bf16 %v539_v30, %v539_v30 }
  0x28   :  { %3372 = vmatprep.mubr.msk.f32.mxu0 %vm3943_vm0, %v3944_v6  ;;  %1951 = vmatpush1.bf16.msra.mxu0 %v3475_v32  ;;  %v3552_v32 = vld [vmem:[%s5462_s4 + $0xc] ss:$24 sps:$4 sm:$0xff]  }
  0x29   :  { %1952 = vmatprep.subr.bf16.mxu0 %v3480_v33  ;;  %v538_v33 = vld [vmem:[%s5463_s1 + $0x10] sm:$0xff] }
  0x2b   :  { %3373 = vmatmul.mubr.msk.f32.gmra.mrb[16].mxu0 %vm53_vm1, %v40_v34  ;;  %v3550_v34 = vld [vmem:[%s5462_s4 + $0x8] ss:$24 sps:$4 sm:$0xff]  }
  0x2c   :  { %3375 = vmatprep.mubr.msk.f32.mxu0 %vm3943_vm0, %v3944_v6  ;;  %1953 = vmatpush1.bf16.msra.mxu0 %v3478_v35  ;;  %v4328_v35 = vpack.c.bf16 %v538_v33, %v538_v33 }
  0x2d   :  { %1954 = vmatprep.subr.bf16.mxu0 %v3483_v36  ;;  %v3555_v36 = vld [vmem:[%s5462_s4 + $0x3c] ss:$24 sps:$4 sm:$0xff]  }
  0x2f   :  { %3376 = vmatmul.mubr.msk.f32.gmra.mrb[18].mxu0 %vm53_vm1, %v41_v37  ;;  %v3553_v37 = vld [vmem:[%s5462_s4 + $0x38] ss:$24 sps:$4 sm:$0xff]  }
  0x30   :  { %3378 = vmatprep.mubr.msk.f32.mxu0 %vm3943_vm0, %v3944_v6  ;;  %1955 = vmatpush1.bf16.msra.mxu0 %v3481_v38  ;;  %v3558_v38 = vld [vmem:[%s5462_s4 + $0x6c] ss:$24 sps:$4 sm:$0xff]  }
  0x31   :  { %1956 = vmatprep.subr.bf16.mxu0 %v3486_v39  ;;  %v3556_v39 = vld [vmem:[%s5462_s4 + $0x68] ss:$24 sps:$4 sm:$0xff]  }
  0x33   :  { %3379 = vmatmul.mubr.msk.f32.gmra.mrb[20].mxu0 %vm53_vm1, %v42_v40  ;;  %v3561_v40 = vld [vmem:[%s5462_s4 + $0x9c] ss:$24 sps:$4 sm:$0xff]  }
  0x34   :  { %3381 = vmatprep.mubr.msk.f32.mxu0 %vm3943_vm0, %v3944_v6  ;;  %1957 = vmatpush1.bf16.msra.mxu0 %v3484_v41  ;;  %v3559_v41 = vld [vmem:[%s5462_s4 + $0x98] ss:$24 sps:$4 sm:$0xff]  }
  0x35   :  { %1958 = vmatprep.subr.bf16.mxu0 %v3489_v42  ;;  %v3564_v42 = vld [vmem:[%s5462_s4 + $0xcc] ss:$24 sps:$4 sm:$0xff]  }
  0x37   :  { %3382 = vmatmul.mubr.msk.f32.gmra.mrb[22].mxu0 %vm53_vm1, %v43_v43  ;;  %v3562_v43 = vld [vmem:[%s5462_s4 + $0xc8] ss:$24 sps:$4 sm:$0xff]  }
  0x38   :  { %3384 = vmatprep.mubr.msk.f32.mxu0 %vm3943_vm0, %v3944_v6  ;;  %1959 = vmatpush1.bf16.msra.mxu0 %v3487_v44  ;;  %v3567_v44 = vld [vmem:[%s5462_s4 + $0xfc] ss:$24 sps:$4 sm:$0xff]  }
  0x39   :  { %1960 = vmatprep.subr.bf16.mxu0 %v3492_v45  ;;  %v3565_v45 = vld [vmem:[%s5462_s4 + $0xf8] ss:$24 sps:$4 sm:$0xff]  }
  0x3b   :  { %3385 = vmatmul.mubr.msk.f32.gmra.mrb[24].mxu0 %vm53_vm1, %v44_v46  ;;  %v3570_v46 = vld [vmem:[%s5462_s4 + $0x12c] ss:$24 sps:$4 sm:$0xff]  }
  0x3c   :  { %3387 = vmatprep.mubr.msk.f32.mxu0 %vm3943_vm0, %v3944_v6  ;;  %1961 = vmatpush1.bf16.msra.mxu0 %v3490_v47  ;;  %v3568_v47 = vld [vmem:[%s5462_s4 + $0x128] ss:$24 sps:$4 sm:$0xff]  }
  0x3d   :  { %1962 = vmatprep.subr.bf16.mxu0 %v3495_v48  ;;  %v3573_v48 = vld [vmem:[%s5462_s4 + $0x15c] ss:$24 sps:$4 sm:$0xff]  }
  0x3f   :  { %3388 = vmatmul.mubr.msk.f32.gmra.mrb[26].mxu0 %vm53_vm1, %v45_v49  ;;  %v3571_v49 = vld [vmem:[%s5462_s4 + $0x158] ss:$24 sps:$4 sm:$0xff]  }
  0x40   :  { %3390 = vmatprep.mubr.msk.f32.mxu0 %vm3943_vm0, %v3944_v6  ;;  %1963 = vmatpush1.bf16.msra.mxu0 %v3493_v50  ;;  %v3576_v50 = vld [vmem:[%s5462_s4 + $0x18c] ss:$24 sps:$4 sm:$0xff]  }
  0x41   :  { %1964 = vmatprep.subr.bf16.mxu0 %v3498_v51  ;;  %v3574_v51 = vld [vmem:[%s5462_s4 + $0x188] ss:$24 sps:$4 sm:$0xff]  }
  0x43   :  { %3391 = vmatmul.mubr.msk.f32.gmra.mrb[28].mxu0 %vm53_vm1, %v46_v52  ;;  %v3579_v52 = vld [vmem:[%s5462_s4 + $0x1bc] ss:$24 sps:$4 sm:$0xff]  }
  0x44   :  { %3393 = vmatprep.mubr.msk.f32.mxu0 %vm3943_vm0, %v3944_v6  ;;  %1965 = vmatpush1.bf16.msra.mxu0 %v3496_v53  ;;  %v3577_v53 = vld [vmem:[%s5462_s4 + $0x1b8] ss:$24 sps:$4 sm:$0xff]  }
  0x45   :  { %1966 = vmatprep.subr.bf16.mxu0 %v3501_v55  ;;  %v3580_v55 = vld [vmem:[%s5462_s4 + $0x1e8] ss:$24 sps:$4 sm:$0xff]  }
  0x47   :  { %3394 = vmatmul.mubr.msk.f32.gmra.mrb[30].mxu0 %vm53_vm1, %v47_v56  ;;  %v3585_v56 = vld [vmem:[%s5462_s4 + $0x21c] ss:$24 sps:$4 sm:$0xff]  }
  0x48   :  { %1968 = vmatprep.mubr.bf16.mxu0 %v4211_v59  ;;  %1967 = vmatpush1.bf16.msra.mxu0 %v3499_v57  ;;  %v3583_v57 = vld [vmem:[%s5462_s4 + $0x218] ss:$24 sps:$4 sm:$0xff]  }
  0x49   :  { %1977 = vmatprep.subr.bf16.mxu0 %v3504_v60  ;;  %v3586_v60 = vld [vmem:[%s5462_s4 + $0x248] ss:$24 sps:$4 sm:$0xff]  }
  0x4b   :  { %1969 = vmatmul.mubr.bf16.vlgmr.msra.gmra.mrb[32].mxu0 %v4221_v62 }
  0x4c   :  { %1978 = vmatpush1.bf16.msra.mxu0 %v3502_v61  ;;  %2009 = vmatprep.mubr.bf16.mxu0 %v4317_v31  ;;  %v4408_v61 = vld [vmem:[%s5464_s3] ss:$0 sm:$0xff] }
  0x4d   :  { %1979 = vmatprep.subr.bf16.mxu0 %v3507_v63  ;;  %v3022_v63 = vld [vmem:[%s5464_s3 + $0x1] ss:$0 sm:$0xff] }
  0x50   :  { %1980 = vmatpush1.bf16.msra.mxu0 %v3505_v0  ;;  %v3591_v0 = vld [vmem:[%s5462_s4 + $0x27c] ss:$24 sps:$4 sm:$0xff]  }
  0x51   :  { %1981 = vmatprep.subr.bf16.mxu0 %v3510_v1  ;;  %v3589_v1 = vld [vmem:[%s5462_s4 + $0x278] ss:$24 sps:$4 sm:$0xff]  }
  0x54   :  { %1982 = vmatpush1.bf16.msra.mxu0 %v3508_v2 }
  0x55   :  { %1983 = vmatprep.subr.bf16.mxu0 %v3513_v3 }
  0x58   :  { %1984 = vmatpush1.bf16.msra.mxu0 %v3511_v4 }
  0x59   :  { %1985 = vmatprep.subr.bf16.mxu0 %v3516_v5 }
  0x5c   :  { %1986 = vmatpush1.bf16.msra.mxu0 %v3514_v7 }
  0x5d   :  { %1987 = vmatprep.subr.bf16.mxu0 %v3519_v8 }
  0x60   :  { %1988 = vmatpush1.bf16.msra.mxu0 %v3517_v9  ;;  %v3594_v9 = vld [vmem:[%s5462_s4 + $0x2ac] ss:$24 sps:$4 sm:$0xff]  }
  0x61   :  { %1989 = vmatprep.subr.bf16.mxu0 %v3522_v10 }
  0x64   :  { %1990 = vmatpush1.bf16.msra.mxu0 %v3520_v11  ;;  %v3592_v11 = vld [vmem:[%s5462_s4 + $0x2a8] ss:$24 sps:$4 sm:$0xff]  }
  0x65   :  { %1991 = vmatprep.subr.bf16.mxu0 %v3525_v12 }
  0x68   :  { %1992 = vmatpush1.bf16.msra.mxu0 %v3523_v13 }
  0x69   :  { %1993 = vmatprep.subr.bf16.mxu0 %v3528_v14 }
  0x6c   :  { %1994 = vmatpush1.bf16.msra.mxu0 %v3526_v15  ;;  %v3597_v15 = vld [vmem:[%s5462_s4 + $0x2dc] ss:$24 sps:$4 sm:$0xff]  }
  0x6d   :  { %1995 = vmatprep.subr.bf16.mxu0 %v3531_v16  ;;  %v3595_v16 = vld [vmem:[%s5462_s4 + $0x2d8] ss:$24 sps:$4 sm:$0xff]  }
  0x70   :  { %1996 = vmatpush1.bf16.msra.mxu0 %v3529_v17 }
  0x71   :  { %1997 = vmatprep.subr.bf16.mxu0 %v3534_v18 }
  0x74   :  { %1998 = vmatpush1.bf16.msra.mxu0 %v3532_v19 }
  0x75   :  { %1999 = vmatprep.subr.bf16.mxu0 %v3537_v20 }
  0x78   :  { %2000 = vmatpush1.bf16.msra.mxu0 %v3535_v21 }
  0x79   :  { %2001 = vmatprep.subr.bf16.mxu0 %v3540_v22  ;;  %v3600_v22 = vld [vmem:[%s5462_s4 + $0x14] ss:$24 sps:$4 sm:$0xff]  }
  0x7c   :  { %2002 = vmatpush1.bf16.msra.mxu0 %v3538_v23 }
  0x7d   :  { %2003 = vmatprep.subr.bf16.mxu0 %v3543_v24  ;;  %v3598_v24 = vld [vmem:[%s5462_s4 + $0x10] ss:$24 sps:$4 sm:$0xff]  }
  0x80   :  { %2004 = vmatpush1.bf16.msra.mxu0 %v3541_v25 }
  0x81   :  { %2005 = vmatprep.subr.bf16.mxu0 %v3546_v26 }
  0x84   :  { %2006 = vmatpush1.bf16.msra.mxu0 %v3544_v27 }
  0x85   :  { %2007 = vmatprep.subr.bf16.mxu0 %v3549_v28 }
  0x88   :  { %2008 = vmatpush1.bf16.msra.mxu0 %v3547_v29  ;;  %v3603_v29 = vld [vmem:[%s5462_s4 + $0x44] ss:$24 sps:$4 sm:$0xff]  }
  0x89   :  { %2018 = vmatprep.subr.bf16.mxu0 %v3552_v32  ;;  %v3601_v32 = vld [vmem:[%s5462_s4 + $0x40] ss:$24 sps:$4 sm:$0xff]  }
  0x8b   :  { %2010 = vmatmul.mubr.bf16.vlgmr.msra.gmra.mrb[36].mxu0 %v4328_v35 }
  0x8c   :  { %2019 = vmatpush1.bf16.msra.mxu0 %v3550_v34  ;;  %2050 = vmatprep.mubr.bf16.mxu0 %v4211_v59 }
  0x8d   :  { %2020 = vmatprep.subr.bf16.mxu0 %v3555_v36 }
  0x90   :  { %2021 = vmatpush1.bf16.msra.mxu0 %v3553_v37 }
  0x91   :  { %2022 = vmatprep.subr.bf16.mxu0 %v3558_v38 }
  0x94   :  { %2023 = vmatpush1.bf16.msra.mxu0 %v3556_v39  ;;  %v3604_v39 = vld [vmem:[%s5462_s4 + $0x70] ss:$24 sps:$4 sm:$0xff]  }
  0x95   :  { %2024 = vmatprep.subr.bf16.mxu0 %v3561_v40 }
  0x98   :  { %2025 = vmatpush1.bf16.msra.mxu0 %v3559_v41 }
  0x99   :  { %2026 = vmatprep.subr.bf16.mxu0 %v3564_v42 }
  0x9c   :  { %2027 = vmatpush1.bf16.msra.mxu0 %v3562_v43 }
  0x9d   :  { %2028 = vmatprep.subr.bf16.mxu0 %v3567_v44 }
  0xa0   :  { %2029 = vmatpush1.bf16.msra.mxu0 %v3565_v45 }
  0xa1   :  { %2030 = vmatprep.subr.bf16.mxu0 %v3570_v46  ;;  %v3609_v46 = vld [vmem:[%s5462_s4 + $0xa4] ss:$24 sps:$4 sm:$0xff]  }
  0xa4   :  { %2031 = vmatpush1.bf16.msra.mxu0 %v3568_v47 }
  0xa5   :  { %2032 = vmatprep.subr.bf16.mxu0 %v3573_v48 }
  0xa8   :  { %2033 = vmatpush1.bf16.msra.mxu0 %v3571_v49 }
  0xa9   :  { %2034 = vmatprep.subr.bf16.mxu0 %v3576_v50  ;;  %v3607_v50 = vld [vmem:[%s5462_s4 + $0xa0] ss:$24 sps:$4 sm:$0xff]  }
  0xac   :  { %2035 = vmatpush1.bf16.msra.mxu0 %v3574_v51 }
  0xad   :  { %2036 = vmatprep.subr.bf16.mxu0 %v3579_v52 }
  0xb0   :  { %2037 = vmatpush1.bf16.msra.mxu0 %v3577_v53 }
  0xb1   :  { %2038 = vmatprep.subr.bf16.mxu0 %v3582_v54 }
  0xb4   :  { %2039 = vmatpush1.bf16.msra.mxu0 %v3580_v55 }
  0xb5   :  { %2040 = vmatprep.subr.bf16.mxu0 %v3585_v56 }
  0xb8   :  { %2041 = vmatpush1.bf16.msra.mxu0 %v3583_v57 }
  0xb9   :  { %2042 = vmatprep.subr.bf16.mxu0 %v3588_v58 }
  0xbc   :  { %2043 = vmatpush1.bf16.msra.mxu0 %v3586_v60  ;;  %v3612_v60 = vld [vmem:[%s5462_s4 + $0xd4] ss:$24 sps:$4 sm:$0xff]  }
  0xbd   :  { %2044 = vmatprep.subr.bf16.mxu0 %v3591_v0 }
  0xc0   :  { %2045 = vmatpush1.bf16.msra.mxu0 %v3589_v1 }
  0xc1   :  { %2046 = vmatprep.subr.bf16.mxu0 %v3594_v9 }
  0xc4   :  { %2047 = vmatpush1.bf16.msra.mxu0 %v3592_v11 }
  0xc5   :  { %2048 = vmatprep.subr.bf16.mxu0 %v3597_v15 }
  0xc8   :  { %2049 = vmatpush1.bf16.msra.mxu0 %v3595_v16 }
  0xc9   :  { %2100 = vmatprep.subr.bf16.mxu0 %v3600_v22 }
  0xcb   :  { %2051 = vmatmul.mubr.bf16.vlgmr.msra.gmra.mrb[40].mxu0 %v4221_v62 }
  0xcc   :  { %2101 = vmatpush1.bf16.msra.mxu0 %v3598_v24  ;;  %2132 = vmatprep.mubr.bf16.mxu0 %v4211_v59  ;;  %v3606_v59 = vld [vmem:[%s5462_s4 + $0x74] ss:$24 sps:$4 sm:$0xff]  }
  0xcd   :  { %2102 = vmatprep.subr.bf16.mxu0 %v3603_v29 }
  0xd0   :  { %2103 = vmatpush1.bf16.msra.mxu0 %v3601_v32 }
  0xd1   :  { %2104 = vmatprep.subr.bf16.mxu0 %v3606_v59 }
  0xd4   :  { %2105 = vmatpush1.bf16.msra.mxu0 %v3604_v39 }
  0xd5   :  { %2106 = vmatprep.subr.bf16.mxu0 %v3609_v46  ;;  %v3621_v46 = vld [vmem:[%s5462_s4 + $0x164] ss:$24 sps:$4 sm:$0xff]  }
  0xd8   :  { %2107 = vmatpush1.bf16.msra.mxu0 %v3607_v50  ;;  %v3619_v50 = vld [vmem:[%s5462_s4 + $0x160] ss:$24 sps:$4 sm:$0xff]  }
  0xd9   :  { %2108 = vmatprep.subr.bf16.mxu0 %v3612_v60 }
  0xde   :  { %v4419_v2 = vpop.f32.mrb[0].mxu0  ;;  %v4421_v3 = vpop.f32.mrb[0].mxu1 }
  0xdf   :  { %v4424_v4 = vmul.f32 %v3022_v63, %v4419_v2  ;;  %v277_v5 = vmul.f32 %v4408_v61, %v4421_v3  ;;  %v3350_v7 = vpop.f32.mrb[1].mxu0  ;;  %v3398_v8 = vpop.f32.mrb[1].mxu1  ;;  %v261_v17 = vmul.f32 %v4408_v61, %v4419_v2 }
  0xe1   :  { %v4432_v10 = vadd.f32 %v4424_v4, %v277_v5  ;;  %v283_v25 = vadd.f32 %v4424_v4, %v261_v17  ;;  %v3610_v5 = vld [vmem:[%s5462_s4 + $0xd0] ss:$24 sps:$4 sm:$0xff]   ;;  %v3615_v17 = vld [vmem:[%s5462_s4 + $0x104] ss:$24 sps:$4 sm:$0xff]  }
  0xe2   :  { %v4437_v12 = vpop.f32.mrb[2].mxu0  ;;  %2109 = vmatpush1.bf16.msra.mxu0 %v3610_v5 }
  0xe3   :  { %v262_v13 = vmul.f32 %v4408_v61, %v4437_v12  ;;  %v3353_v14 = vpop.f32.mrb[3].mxu0  ;;  %v317_v33 = vmul.f32 0.2, %v283_v25  ;;  %vm300_vm2 = vcmp.ge.f32.partialorder %v283_v25, 0.0  ;;  %2110 = vmatprep.subr.bf16.mxu0 %v3615_v17  ;;  %vm316_vm14 = vcmp.ge.f32.partialorder %v4432_v10, 0.0 }
  0xe5   :  { %v284_v18 = vadd.f32 %v4424_v4, %v262_v13  ;;  %v4486_v40 = vsel %vm300_vm2, %v283_v25, %v317_v33  ;;  %v3618_v33 = vld [vmem:[%s5462_s4 + $0x134] ss:$24 sps:$4 sm:$0xff]  }
  0xe6   :  { %v4450_v19 = vpop.f32.mrb[4].mxu0  ;;  %v4497_v47 = vsel %vm53_vm1, %v4486_v40, -inf }
  0xe7   :  { %v263_v20 = vmul.f32 %v4408_v61, %v4450_v19  ;;  %v3356_v21 = vpop.f32.mrb[5].mxu0  ;;  %v318_v41 = vmul.f32 0.2, %v284_v18  ;;  %vm301_vm3 = vcmp.ge.f32.partialorder %v284_v18, 0.0 }
  0xe8   :  { %v3613_v21 = vld [vmem:[%s5462_s4 + $0x100] ss:$24 sps:$4 sm:$0xff]  }
  0xe9   :  { %v285_v23 = vadd.f32 %v4424_v4, %v263_v20  ;;  %v4505_v51 = vsel %vm301_vm3, %v284_v18, %v318_v41  ;;  %2111 = vmatpush1.bf16.msra.mxu0 %v3613_v21 }
  0xea   :  { %v4462_v26 = vpop.f32.mrb[6].mxu0  ;;  %v4522_v63 = vsel %vm53_vm1, %v4505_v51, -inf  ;;  %2112 = vmatprep.subr.bf16.mxu0 %v3618_v33 }
  0xeb   :  { %v264_v27 = vmul.f32 %v4408_v61, %v4462_v26  ;;  %v3359_v28 = vpop.f32.mrb[7].mxu0  ;;  %vm302_vm5 = vcmp.ge.f32.partialorder %v285_v23, 0.0  ;;  %v319_v52 = vmul.f32 0.2, %v285_v23 }
  0xed   :  { %v286_v30 = vadd.f32 %v4424_v4, %v264_v27  ;;  %v4531_v7 = vsel %vm302_vm5, %v285_v23, %v319_v52 }
  0xee   :  { %v4475_v34 = vpop.f32.mrb[8].mxu0  ;;  %v353_v22 = vsel %vm53_vm1, %v4531_v7, -inf }
  0xef   :  { %v265_v36 = vmul.f32 %v4408_v61, %v4475_v34  ;;  %v3362_v37 = vpop.f32.mrb[9].mxu0  ;;  %vm303_vm7 = vcmp.ge.f32.partialorder %v286_v30, 0.0  ;;  %v320_v8 = vmul.f32 0.2, %v286_v30 }
  0xf0   :  { %v3616_v37 = vld [vmem:[%s5462_s4 + $0x130] ss:$24 sps:$4 sm:$0xff]  }
  0xf1   :  { %v287_v38 = vadd.f32 %v4424_v4, %v265_v36  ;;  %v4552_v23 = vsel %vm303_vm7, %v286_v30, %v320_v8  ;;  %2113 = vmatpush1.bf16.msra.mxu0 %v3616_v37 }
  0xf2   :  { %v4488_v42 = vpop.f32.mrb[10].mxu0  ;;  %v4571_v59 = vsel %vm53_vm1, %v4552_v23, -inf  ;;  %2114 = vmatprep.subr.bf16.mxu0 %v3621_v46  ;;  %v333_v46 = vmul.f32 0.2, %v4432_v10 }
  0xf3   :  { %vm304_vm4 = vcmp.ge.f32.partialorder %v287_v38, 0.0  ;;  %v321_v43 = vmul.f32 0.2, %v287_v38  ;;  %v266_v44 = vmul.f32 %v4408_v61, %v4488_v42  ;;  %v3365_v45 = vpop.f32.mrb[11].mxu0 }
  0xf5   :  { %v4499_v48 = vsel %vm304_vm4, %v287_v38, %v321_v43  ;;  %v288_v49 = vadd.f32 %v4424_v4, %v266_v44  ;;  %2115 = vmatpush1.bf16.msra.mxu0 %v3619_v50  ;;  %v742_v50 = vld [vmem:[%s5465_s5 + $0x30] sm:$0xff] }
  0xf6   :  { %v4509_v53 = vsel %vm53_vm1, %v4499_v48, -inf  ;;  %v4511_v54 = vpop.f32.mrb[12].mxu0 }
  0xf7   :  { %v356_v55 = vmax.f32 %v4497_v47, %v4509_v53  ;;  %vm305_vm6 = vcmp.ge.f32.partialorder %v288_v49, 0.0  ;;  %v322_v56 = vmul.f32 0.2, %v288_v49  ;;  %v267_v57 = vmul.f32 %v4408_v61, %v4511_v54  ;;  %v3368_v58 = vpop.f32.mrb[13].mxu0 }
  0xf9   :  { %v4524_v0 = vsel %vm305_vm6, %v288_v49, %v322_v56  ;;  %v289_v1 = vadd.f32 %v4424_v4, %v267_v57 }
  0xfa   :  { %v357_v9 = vsel %vm53_vm1, %v4524_v0, -inf  ;;  %v4535_v11 = vpop.f32.mrb[14].mxu0 }
  0xfb   :  { %v358_v13 = vmax.f32 %v4522_v63, %v357_v9  ;;  %vm306_vm8 = vcmp.ge.f32.partialorder %v289_v1, 0.0  ;;  %v323_v14 = vmul.f32 0.2, %v289_v1  ;;  %v268_v15 = vmul.f32 %v4408_v61, %v4535_v11  ;;  %v3371_v16 = vpop.f32.mrb[15].mxu0  ;;  %v3624_v63 = vld [vmem:[%s5462_s4 + $0x194] ss:$24 sps:$4 sm:$0xff]  }
  0xfc   :  { %2116 = vmatprep.subr.bf16.mxu0 %v3624_v63  ;;  %v755_v63 = vld [vmem:[%s5465_s5 + $0x98] sm:$0xff] }
  0xfd   :  { %v4543_v18 = vsel %vm306_vm8, %v289_v1, %v323_v14  ;;  %v290_v20 = vadd.f32 %v4424_v4, %v268_v15 }
  0xfe   :  { %v359_v24 = vsel %vm53_vm1, %v4543_v18, -inf  ;;  %v4556_v25 = vpop.f32.mrb[16].mxu0 }
  0xff   :  { %v360_v27 = vmax.f32 %v353_v22, %v359_v24  ;;  %vm307_vm9 = vcmp.ge.f32.partialorder %v290_v20, 0.0  ;;  %v324_v28 = vmul.f32 0.2, %v290_v20  ;;  %v269_v29 = vmul.f32 %v4408_v61, %v4556_v25  ;;  %v3374_v32 = vpop.f32.mrb[17].mxu0 }
 0x100   :  { %v3630_v32 = vld [vmem:[%s5462_s4 + $0x1f4] ss:$24 sps:$4 sm:$0xff]  }
 0x101   :  { %v4563_v30 = vsel %vm307_vm9, %v290_v20, %v324_v28  ;;  %v291_v36 = vadd.f32 %v4424_v4, %v269_v29  ;;  %v3627_v20 = vld [vmem:[%s5462_s4 + $0x1c4] ss:$24 sps:$4 sm:$0xff]   ;;  %v3628_v29 = vld [vmem:[%s5462_s4 + $0x1f0] ss:$24 sps:$4 sm:$0xff]  }
 0x102   :  { %v4575_v38 = vsel %vm53_vm1, %v4563_v30, -inf  ;;  %v4577_v39 = vpop.f32.mrb[18].mxu0 }
 0x103   :  { %v362_v41 = vmax.f32 %v4571_v59, %v4575_v38  ;;  %vm308_vm10 = vcmp.ge.f32.partialorder %v291_v36, 0.0  ;;  %v325_v43 = vmul.f32 0.2, %v291_v36  ;;  %v270_v44 = vmul.f32 %v4408_v61, %v4577_v39  ;;  %v3377_v45 = vpop.f32.mrb[19].mxu0  ;;  %v3636_v59 = vld [vmem:[%s5462_s4 + $0x254] ss:$24 sps:$4 sm:$0xff]  }
 0x104   :  { %v743_v45 = vld [vmem:[%s5465_s5 + $0x38] sm:$0xff]  ;;  %v4696_v38 = vsel %vm316_vm14, %v4432_v10, %v333_v46  ;;  %v3634_v10 = vld [vmem:[%s5462_s4 + $0x250] ss:$24 sps:$4 sm:$0xff]  }
 0x105   :  { %v4586_v47 = vsel %vm308_vm10, %v291_v36, %v325_v43  ;;  %v292_v49 = vadd.f32 %v4424_v4, %v270_v44  ;;  %v737_v44 = vld [vmem:[%s5465_s5 + $0x8] sm:$0xff]  ;;  %v379_v46 = vsel %vm53_vm1, %v4696_v38, -inf }
 0x106   :  { %v363_v52 = vsel %vm53_vm1, %v4586_v47, -inf  ;;  %v4594_v53 = vpop.f32.mrb[20].mxu0 }
 0x107   :  { %v4596_v56 = vmax.f32 %v356_v55, %v363_v52  ;;  %vm309_vm11 = vcmp.ge.f32.partialorder %v292_v49, 0.0  ;;  %v326_v57 = vmul.f32 0.2, %v292_v49  ;;  %v271_v58 = vmul.f32 %v4408_v61, %v4594_v53  ;;  %v3380_v60 = vpop.f32.mrb[21].mxu0  ;;  %v3622_v55 = vld [vmem:[%s5462_s4 + $0x190] ss:$24 sps:$4 sm:$0xff]  }
 0x108   :  { %2117 = vmatpush1.bf16.msra.mxu0 %v3622_v55  ;;  %v749_v52 = vld [vmem:[%s5465_s5 + $0x68] sm:$0xff]  ;;  %v3633_v55 = vld [vmem:[%s5462_s4 + $0x224] ss:$24 sps:$4 sm:$0xff]  }
 0x109   :  { %v4603_v1 = vsel %vm309_vm11, %v292_v49, %v326_v57  ;;  %v293_v5 = vadd.f32 %v4424_v4, %v271_v58  ;;  %2118 = vmatprep.subr.bf16.mxu0 %v3627_v20  ;;  %v3405_v49 = vpack.c.bf16 %v743_v45, %v737_v44  ;;  %v754_v20 = vld [vmem:[%s5465_s5 + $0x90] sm:$0xff] }
 0x10a   :  { %v365_v8 = vsel %vm53_vm1, %v4603_v1, -inf  ;;  %v4611_v9 = vpop.f32.mrb[22].mxu0 }
 0x10b   :  { %v4613_v14 = vmax.f32 %v358_v13, %v365_v8  ;;  %vm310_vm12 = vcmp.ge.f32.partialorder %v293_v5, 0.0  ;;  %v327_v15 = vmul.f32 0.2, %v293_v5  ;;  %v272_v16 = vmul.f32 %v4408_v61, %v4611_v9  ;;  %v3383_v17 = vpop.f32.mrb[23].mxu0  ;;  %v3625_v13 = vld [vmem:[%s5462_s4 + $0x1c0] ss:$24 sps:$4 sm:$0xff]   ;;  %3406 = vmatprep.subr.bf16.mxu1 %v3405_v49 }
 0x10c   :  { %2119 = vmatpush1.bf16.msra.mxu0 %v3625_v13  ;;  %v748_v17 = vld [vmem:[%s5465_s5 + $0x60] sm:$0xff] }
 0x10d   :  { %v4620_v21 = vsel %vm310_vm12, %v293_v5, %v327_v15  ;;  %v294_v22 = vadd.f32 %v4424_v4, %v272_v16  ;;  %2120 = vmatprep.subr.bf16.mxu0 %v3630_v32  ;;  %v3631_v5 = vld [vmem:[%s5462_s4 + $0x220] ss:$24 sps:$4 sm:$0xff]   ;;  %v3409_v16 = vpack.c.bf16 %v755_v63, %v749_v52 }
 0x10e   :  { %v367_v24 = vsel %vm53_vm1, %v4620_v21, -inf  ;;  %v4628_v28 = vpop.f32.mrb[24].mxu0 }
 0x10f   :  { %v4636_v33 = vmax.f32 %v360_v27, %v367_v24  ;;  %vm311_vm13 = vcmp.ge.f32.partialorder %v294_v22, 0.0  ;;  %v328_v36 = vmul.f32 0.2, %v294_v22  ;;  %v273_v37 = vmul.f32 %v4408_v61, %v4628_v28  ;;  %v3386_v43 = vpop.f32.mrb[25].mxu0  ;;  %v736_v27 = vld [vmem:[%s5465_s5] sm:$0xff] }
 0x110   :  { %v3407_v60 = vpack.c.bf16 %v742_v50, %v736_v27  ;;  %2121 = vmatpush1.bf16.msra.mxu0 %v3628_v29  ;;  %v3411_v43 = vpack.c.bf16 %v754_v20, %v748_v17 }
 0x111   :  { %v4656_v57 = vsel %vm311_vm13, %v294_v22, %v328_v36  ;;  %v295_v58 = vadd.f32 %v4424_v4, %v273_v37  ;;  %v739_v22 = vld [vmem:[%s5465_s5 + $0x18] sm:$0xff]  ;;  %v745_v37 = vld [vmem:[%s5465_s5 + $0x48] sm:$0xff]  ;;  %2122 = vmatprep.subr.bf16.mxu0 %v3633_v55 }
 0x112   :  { %v369_v8 = vsel %vm53_vm1, %v4656_v57, -inf  ;;  %v4671_v15 = vpop.f32.mrb[26].mxu0  ;;  %3408 = vmatpush1.bf16.msra.mxu1 %v3407_v60  ;;  %v3413_v44 = vpack.c.bf16 %v745_v37, %v739_v22 }
 0x113   :  { %v370_v13 = vmax.f32 %v362_v41, %v369_v8  ;;  %vm312_vm15 = vcmp.ge.f32.partialorder %v295_v58, 0.0  ;;  %v329_v24 = vmul.f32 0.2, %v295_v58  ;;  %v274_v32 = vmul.f32 %v4408_v61, %v4671_v15  ;;  %v3389_v36 = vpop.f32.mrb[27].mxu0  ;;  %3410 = vmatprep.subr.bf16.mxu1 %v3409_v16 }
 0x114   :  { %2123 = vmatpush1.bf16.msra.mxu0 %v3631_v5 }
 0x115   :  { %v4698_v41 = vsel %vm312_vm15, %v295_v58, %v329_v24  ;;  %v296_v29 = vadd.f32 %v4424_v4, %v274_v32  ;;  %2124 = vmatprep.subr.bf16.mxu0 %v3636_v59  ;;  %v3637_v24 = vld [vmem:[%s5462_s4 + $0x280] ss:$24 sps:$4 sm:$0xff]   ;;  %v3642_v32 = vld [vmem:[%s5462_s4 + $0x2b4] ss:$24 sps:$4 sm:$0xff]   ;;  %v3640_v59 = vld [vmem:[%s5462_s4 + $0x2b0] ss:$24 sps:$4 sm:$0xff]  }
 0x116   :  { %v371_v45 = vsel %vm53_vm1, %v4698_v41, -inf  ;;  %v4703_v49 = vpop.f32.mrb[28].mxu0  ;;  %3412 = vmatpush1.bf16.msra.mxu1 %v3411_v43 }
 0x117   :  { %v372_v27 = vmax.f32 %v4596_v56, %v371_v45  ;;  %vm313_vm0 = vcmp.ge.f32.partialorder %v296_v29, 0.0  ;;  %v330_v50 = vmul.f32 0.2, %v296_v29  ;;  %v275_v52 = vmul.f32 %v4408_v61, %v4703_v49  ;;  %v3392_v60 = vpop.f32.mrb[29].mxu0  ;;  %3414 = vmatprep.subr.bf16.mxu1 %v3413_v44  ;;  %v3639_v56 = vld [vmem:[%s5462_s4 + $0x284] ss:$24 sps:$4 sm:$0xff]  }
 0x118   :  { %2125 = vmatpush1.bf16.msra.mxu0 %v3634_v10 }
 0x119   :  { %v380_v58 = vmax.f32 %v372_v27, %v379_v46  ;;  %v4716_v63 = vsel %vm313_vm0, %v296_v29, %v330_v50  ;;  %v297_v55 = vadd.f32 %v4424_v4, %v275_v52  ;;  %2126 = vmatprep.subr.bf16.mxu0 %v3639_v56  ;;  %v3645_v29 = vld [vmem:[%s5462_s4 + $0x2e4] ss:$24 sps:$4 sm:$0xff]  }
 0x11a   :  { %v373_v5 = vsel %vm53_vm1, %v4716_v63, -inf  ;;  %v4721_v8 = vpop.f32.mrb[30].mxu0 }
 0x11b   :  { %v374_v16 = vmax.f32 %v4613_v14, %v373_v5  ;;  %vm314_vm2 = vcmp.ge.f32.partialorder %v297_v55, 0.0  ;;  %v331_v17 = vmul.f32 0.2, %v297_v55  ;;  %v276_v20 = vmul.f32 %v4408_v61, %v4721_v8  ;;  %v3395_v22 = vpop.f32.mrb[31].mxu0 }
 0x11c   :  { %2127 = vmatpush1.bf16.msra.mxu0 %v3637_v24 }
 0x11d   :  { %v381_v36 = vmax.f32 %v380_v58, %v374_v16  ;;  %v4732_v37 = vsel %vm314_vm2, %v297_v55, %v331_v17  ;;  %v298_v14 = vadd.f32 %v4424_v4, %v276_v20  ;;  %2128 = vmatprep.subr.bf16.mxu0 %v3642_v32 }
 0x11e   :  { %v375_v43 = vsel %vm53_vm1, %v4732_v37, -inf }
 0x11f   :  { %v376_v61 = vmax.f32 %v4636_v33, %v375_v43  ;;  %vm315_vm3 = vcmp.ge.f32.partialorder %v298_v14, 0.0  ;;  %v332_v44 = vmul.f32 0.2, %v298_v14  ;;  %v3643_v33 = vld [vmem:[%s5462_s4 + $0x2e0] ss:$24 sps:$4 sm:$0xff]  }
 0x120   :  { %2129 = vmatpush1.bf16.msra.mxu0 %v3640_v59 }
 0x121   :  { %v4744_v45 = vsel %vm315_vm3, %v298_v14, %v332_v44  ;;  %2130 = vmatprep.subr.bf16.mxu0 %v3645_v29 }
 0x122   :  { %v377_v4 = vsel %vm53_vm1, %v4744_v45, -inf }
 0x123   :  { %v378_v27 = vmax.f32 %v370_v13, %v377_v4 }
 0x124   :  { %2131 = vmatpush1.bf16.msra.mxu0 %v3643_v33 }
 0x125   :  { %v382_v50 = vmax.f32 %v376_v61, %v378_v27 }
 0x127   :  { %v4751_v52 = vmax.f32 %v381_v36, %v382_v50  ;;  %2133 = vmatmul.mubr.bf16.vlgmr.msra.gmra.mrb[44].mxu0 %v4221_v62 }
 0x129   :  { %v384_v60 = vsub.f32 %v4486_v40, %v4751_v52  ;;  %v385_v10 = vsub.f32 %v4505_v51, %v4751_v52  ;;  %v386_v46 = vsub.f32 %v4531_v7, %v4751_v52  ;;  %v387_v13 = vsub.f32 %v4552_v23, %v4751_v52 }
 0x12a   :  { %v388_v56 = vsub.f32 %v4499_v48, %v4751_v52  ;;  %v389_v58 = vsub.f32 %v4524_v0, %v4751_v52  ;;  %v390_v55 = vsub.f32 %v4543_v18, %v4751_v52  ;;  %v391_v40 = vsub.f32 %v4563_v30, %v4751_v52 }
 0x12b   :  { %v392_v51 = vsub.f32 %v4586_v47, %v4751_v52  ;;  %v393_v7 = vsub.f32 %v4603_v1, %v4751_v52  ;;  %v394_v48 = vsub.f32 %v4620_v21, %v4751_v52  ;;  %v395_v0 = vsub.f32 %v4656_v57, %v4751_v52 }
 0x12c   :  { %v396_v18 = vsub.f32 %v4698_v41, %v4751_v52  ;;  %v397_v23 = vsub.f32 %v4716_v63, %v4751_v52  ;;  %v398_v62 = vsub.f32 %v4732_v37, %v4751_v52  ;;  %v399_v30 = vsub.f32 %v4744_v45, %v4751_v52 }
 0x12d   :  { %v400_v47 = vsub.f32 %v4696_v38, %v4751_v52  ;;  %v401_v1 = vmul.f32 1.442695, %v384_v60  ;;  %v403_v21 = vmul.f32 1.442695, %v385_v10  ;;  %v405_v5 = vmul.f32 1.442695, %v386_v46 }
 0x12e   :  { %v407_v16 = vmul.f32 1.442695, %v387_v13  ;;  %v409_v57 = vmul.f32 1.442695, %v388_v56  ;;  %v411_v41 = vmul.f32 1.442695, %v389_v58 }
 0x12f   :  { %3886 = vpow2.f32 %v401_v1  ;;  %v413_v63 = vmul.f32 1.442695, %v390_v55  ;;  %v415_v17 = vmul.f32 1.442695, %v391_v40  ;;  %v417_v20 = vmul.f32 1.442695, %v392_v51 }
 0x130   :  { %3888 = vpow2.f32 %v403_v21  ;;  %v419_v38 = vmul.f32 1.442695, %v393_v7  ;;  %v421_v43 = vmul.f32 1.442695, %v394_v48  ;;  %v423_v29 = vmul.f32 1.442695, %v395_v0 }
 0x131   :  { %3890 = vpow2.f32 %v405_v5  ;;  %v425_v33 = vmul.f32 1.442695, %v396_v18  ;;  %v427_v10 = vmul.f32 1.442695, %v397_v23  ;;  %v429_v58 = vmul.f32 1.442695, %v398_v62 }
 0x132   :  { %3892 = vpow2.f32 %v407_v16  ;;  %v431_v7 = vmul.f32 1.442695, %v399_v30  ;;  %v433_v1 = vmul.f32 1.442695, %v400_v47 }
 0x133   :  { %3894 = vpow2.f32 %v409_v57 }
 0x134   :  { %3896 = vpow2.f32 %v411_v41 }
 0x135   :  { %3898 = vpow2.f32 %v413_v63 }
 0x136   :  { %3900 = vpow2.f32 %v415_v17 }
 0x137   :  { %3902 = vpow2.f32 %v417_v20 }
 0x138   :  { %3904 = vpow2.f32 %v419_v38 }
 0x139   :  { %v4788_v22 = vpop.eup %3886  ;;  %3906 = vpow2.f32 %v421_v43 }
 0x13a   :  { %v4790_v24 = vpop.eup %3888  ;;  %v435_v32 = vsel %vm53_vm1, %v4788_v22, 0.0  ;;  %3908 = vpow2.f32 %v423_v29 }
 0x13b   :  { %v4794_v36 = vpop.eup %3890  ;;  %v436_v37 = vsel %vm53_vm1, %v4790_v24, 0.0  ;;  %3910 = vpow2.f32 %v425_v33 }
 0x13c   :  { %v4798_v14 = vpop.eup %3892  ;;  %v437_v61 = vadd.f32 %v436_v37, %v435_v32  ;;  %v438_v44 = vsel %vm53_vm1, %v4794_v36, 0.0  ;;  %3912 = vpow2.f32 %v427_v10 }
 0x13d   :  { %v3895_v59 = vpop.eup %3894  ;;  %v440_v4 = vsel %vm53_vm1, %v4798_v14, 0.0  ;;  %3914 = vpow2.f32 %v429_v58 }
 0x13e   :  { %v439_v45 = vadd.f32 %v438_v44, %v437_v61  ;;  %v3897_v27 = vpop.eup %3896  ;;  %v442_v52 = vsel %vm53_vm1, %v3895_v59, 0.0  ;;  %3916 = vpow2.f32 %v431_v7 }
 0x13f   :  { %v3899_v60 = vpop.eup %3898  ;;  %v444_v13 = vsel %vm53_vm1, %v3897_v27, 0.0  ;;  %3918 = vpow2.f32 %v433_v1 }
 0x140   :  { %v441_v50 = vadd.f32 %v440_v4, %v439_v45  ;;  %v3901_v56 = vpop.eup %3900  ;;  %v446_v40 = vsel %vm53_vm1, %v3899_v60, 0.0 }
 0x141   :  { %v3903_v51 = vpop.eup %3902  ;;  %v448_v0 = vsel %vm53_vm1, %v3901_v56, 0.0 }
 0x142   :  { %v443_v46 = vadd.f32 %v442_v52, %v441_v50  ;;  %v3905_v18 = vpop.eup %3904  ;;  %v450_v23 = vsel %vm53_vm1, %v3903_v51, 0.0 }
 0x143   :  { %v3907_v5 = vpop.eup %3906  ;;  %v452_v62 = vsel %vm53_vm1, %v3905_v18, 0.0 }
 0x144   :  { %v445_v55 = vadd.f32 %v444_v13, %v443_v46  ;;  %v3909_v57 = vpop.eup %3908  ;;  %v454_v63 = vsel %vm53_vm1, %v3907_v5, 0.0 }
 0x145   :  { %v3911_v30 = vpop.eup %3910  ;;  %v456_v20 = vsel %vm53_vm1, %v3909_v57, 0.0 }
 0x146   :  { %v447_v48 = vadd.f32 %v446_v40, %v445_v55  ;;  %v3913_v38 = vpop.eup %3912  ;;  %v458_v47 = vsel %vm53_vm1, %v3911_v30, 0.0 }
 0x147   :  { %v3915_v37 = vpop.eup %3914  ;;  %v460_v61 = vsel %vm53_vm1, %v3913_v38, 0.0 }
 0x148   :  { %v449_v21 = vadd.f32 %v448_v0, %v447_v48  ;;  %v3917_v44 = vpop.eup %3916  ;;  %v462_v45 = vsel %vm53_vm1, %v3915_v37, 0.0 }
 0x149   :  { %v3919_v4 = vpop.eup %3918  ;;  %v464_v50 = vsel %vm53_vm1, %v3917_v44, 0.0 }
 0x14a   :  { %v451_v16 = vadd.f32 %v450_v23, %v449_v21  ;;  %v466_v10 = vsel %vm53_vm1, %v3919_v4, 0.0 }
 0x14c   :  { %v453_v41 = vadd.f32 %v452_v62, %v451_v16 }
 0x14e   :  { %v455_v17 = vadd.f32 %v454_v63, %v453_v41 }
 0x150   :  { %v457_v32 = vadd.f32 %v456_v20, %v455_v17 }
 0x152   :  { %v459_v43 = vadd.f32 %v458_v47, %v457_v32 }
 0x154   :  { %v461_v29 = vadd.f32 %v460_v61, %v459_v43 }
 0x156   :  { %v463_v33 = vadd.f32 %v462_v45, %v461_v29 }
 0x158   :  { %v465_v52 = vadd.f32 %v464_v50, %v463_v33 }
 0x15a   :  { %v467_v46 = vadd.f32 %v466_v10, %v465_v52 }
 0x15c   :  { %3920 = vrcp.f32 %v467_v46 }
 0x166   :  { %v3921_v13 = vpop.eup %3920 }
 0x167   :  { %v469_v58 = vmul.f32 %v3921_v13, %v4788_v22  ;;  %v470_v55 = vmul.f32 %v3921_v13, %v4790_v24  ;;  %v471_v40 = vmul.f32 %v3921_v13, %v4794_v36  ;;  %v472_v7 = vmul.f32 %v3921_v13, %v4798_v14 }
 0x168   :  { %v473_v48 = vmul.f32 %v3921_v13, %v3895_v59  ;;  %v474_v0 = vmul.f32 %v3921_v13, %v3897_v27  ;;  %v475_v1 = vmul.f32 %v3921_v13, %v3899_v60  ;;  %v476_v21 = vmul.f32 %v3921_v13, %v3901_v56 }
 0x169   :  { %v477_v23 = vmul.f32 %v3921_v13, %v3903_v51  ;;  %v478_v16 = vmul.f32 %v3921_v13, %v3905_v18  ;;  %v479_v62 = vmul.f32 %v3921_v13, %v3907_v5  ;;  %v480_v41 = vmul.f32 %v3921_v13, %v3909_v57 }
 0x16a   :  { %v481_v63 = vmul.f32 %v3921_v13, %v3911_v30  ;;  %v482_v17 = vmul.f32 %v3921_v13, %v3913_v38  ;;  %v483_v20 = vmul.f32 %v3921_v13, %v3915_v37  ;;  %v484_v32 = vmul.f32 %v3921_v13, %v3917_v44 }
 0x16b   :  { %v485_v47 = vmul.f32 %v3921_v13, %v3919_v4  ;;  %v486_v22 = vmul.f32 %v469_v58, %v4419_v2  ;;  %v487_v24 = vmul.f32 %v470_v55, %v4437_v12  ;;  %v488_v36 = vmul.f32 %v471_v40, %v4450_v19  ;;  %v738_v40 = vld [vmem:[%s5465_s5 + $0x10] sm:$0xff] }
 0x16c   :  { %v489_v14 = vmul.f32 %v472_v7, %v4462_v26  ;;  %v490_v59 = vmul.f32 %v473_v48, %v4475_v34  ;;  %v491_v27 = vmul.f32 %v474_v0, %v4488_v42  ;;  %v492_v60 = vmul.f32 %v475_v1, %v4511_v54  ;;  %v744_v7 = vld [vmem:[%s5465_s5 + $0x40] sm:$0xff]  ;;  %v751_v0 = vld [vmem:[%s5465_s5 + $0x78] sm:$0xff]  ;;  %v757_v1 = vld [vmem:[%s5465_s5 + $0xa8] sm:$0xff] }
 0x16d   :  { %v493_v56 = vmul.f32 %v476_v21, %v4535_v11  ;;  %v494_v51 = vmul.f32 %v477_v23, %v4556_v25  ;;  %v495_v18 = vmul.f32 %v478_v16, %v4577_v39  ;;  %v496_v2 = vmul.f32 %v479_v62, %v4594_v53 }
 0x16e   :  { %v497_v12 = vmul.f32 %v480_v41, %v4611_v9  ;;  %v498_v19 = vmul.f32 %v481_v63, %v4628_v28  ;;  %v499_v26 = vmul.f32 %v482_v17, %v4671_v15  ;;  %v500_v34 = vmul.f32 %v483_v20, %v4703_v49  ;;  %v750_v63 = vld [vmem:[%s5465_s5 + $0x70] sm:$0xff]  ;;  %v756_v17 = vld [vmem:[%s5465_s5 + $0xa0] sm:$0xff]  ;;  %v741_v20 = vld [vmem:[%s5465_s5 + $0x28] sm:$0xff] }
 0x16f   :  { %v501_v42 = vmul.f32 %v484_v32, %v4721_v8  ;;  %v502_v54 = vmul.f32 %v485_v47, %v4421_v3  ;;  %v503_v11 = vsel %vm53_vm1, %v486_v22, 0.0  ;;  %v504_v25 = vsel %vm53_vm1, %v487_v24, 0.0  ;;  %v747_v32 = vld [vmem:[%s5465_s5 + $0x58] sm:$0xff]  ;;  %v740_v24 = vld [vmem:[%s5465_s5 + $0x20] sm:$0xff] }
 0x170   :  { %v505_v5 = vadd.f32 %v504_v25, %v503_v11  ;;  %v506_v39 = vsel %vm53_vm1, %v488_v36, 0.0  ;;  %v508_v9 = vsel %vm53_vm1, %v489_v14, 0.0  ;;  %v510_v28 = vsel %vm53_vm1, %v490_v59, 0.0  ;;  %v746_v36 = vld [vmem:[%s5465_s5 + $0x50] sm:$0xff]  ;;  %v753_v14 = vld [vmem:[%s5465_s5 + $0x88] sm:$0xff]  ;;  %v759_v59 = vld [vmem:[%s5465_s5 + $0xb8] sm:$0xff] }
 0x171   :  { %v512_v49 = vsel %vm53_vm1, %v491_v27, 0.0  ;;  %v514_v8 = vsel %vm53_vm1, %v492_v60, 0.0  ;;  %v516_v38 = vsel %vm53_vm1, %v493_v56, 0.0  ;;  %v518_v43 = vsel %vm53_vm1, %v494_v51, 0.0  ;;  %v752_v56 = vld [vmem:[%s5465_s5 + $0x80] sm:$0xff]  ;;  %v758_v51 = vld [vmem:[%s5465_s5 + $0xb0] sm:$0xff] }
 0x172   :  { %v507_v53 = vadd.f32 %v506_v39, %v505_v5  ;;  %v520_v44 = vsel %vm53_vm1, %v495_v18, 0.0  ;;  %v522_v45 = vsel %vm53_vm1, %v496_v2, 0.0  ;;  %v524_v33 = vsel %vm53_vm1, %v497_v12, 0.0  ;;  %v3648_v2 = vld [vmem:[%s5462_s4 + $0x30c] ss:$24 sps:$4 sm:$0xff]  }
 0x173   :  { %v526_v52 = vsel %vm53_vm1, %v498_v19, 0.0  ;;  %v528_v46 = vsel %vm53_vm1, %v499_v26, 0.0  ;;  %v530_v58 = vsel %vm53_vm1, %v500_v34, 0.0  ;;  %v532_v48 = vsel %vm53_vm1, %v501_v42, 0.0  ;;  %v3646_v12 = vld [vmem:[%s5462_s4 + $0x308] ss:$24 sps:$4 sm:$0xff]  }
 0x174   :  { %v509_v57 = vadd.f32 %v508_v9, %v507_v53  ;;  %v534_v23 = vsel %vm53_vm1, %v502_v54, 0.0  ;;  %v3415_v16 = vpack.c.bf16 %v744_v7, %v738_v40  ;;  %v3417_v41 = vpack.c.bf16 %v757_v1, %v751_v0  ;;  %v3651_v19 = vld [vmem:[%s5462_s4 + $0x33c] ss:$24 sps:$4 sm:$0xff]   ;;  %v3654_v26 = vld [vmem:[%s5462_s4 + $0x36c] ss:$24 sps:$4 sm:$0xff]  }
 0x175   :  { %v3419_v47 = vpack.c.bf16 %v756_v17, %v750_v63  ;;  %v3421_v22 = vpack.c.bf16 %v747_v32, %v741_v20  ;;  %v3423_v27 = vpack.c.bf16 %v746_v36, %v740_v24  ;;  %v3425_v60 = vpack.c.bf16 %v759_v59, %v753_v14  ;;  %v3652_v34 = vld [vmem:[%s5462_s4 + $0x368] ss:$24 sps:$4 sm:$0xff]   ;;  %v3657_v42 = vld [vmem:[%s5462_s4 + $0x39c] ss:$24 sps:$4 sm:$0xff]   ;;  %v3655_v54 = vld [vmem:[%s5462_s4 + $0x398] ss:$24 sps:$4 sm:$0xff]  }
 0x176   :  { %v511_v15 = vadd.f32 %v510_v28, %v509_v57  ;;  %v3427_v18 = vpack.c.bf16 %v758_v51, %v752_v56  ;;  %v3660_v11 = vld [vmem:[%s5462_s4 + $0x3cc] ss:$24 sps:$4 sm:$0xff]   ;;  %v3658_v25 = vld [vmem:[%s5462_s4 + $0x3c8] ss:$24 sps:$4 sm:$0xff]   ;;  %v3663_v5 = vld [vmem:[%s5462_s4 + $0x3fc] ss:$24 sps:$4 sm:$0xff]  }
 0x177   :  { %v3661_v39 = vld [vmem:[%s5462_s4 + $0x3f8] ss:$24 sps:$4 sm:$0xff]   ;;  %v3666_v53 = vld [vmem:[%s5462_s4 + $0x42c] ss:$24 sps:$4 sm:$0xff]   ;;  %v3664_v9 = vld [vmem:[%s5462_s4 + $0x428] ss:$24 sps:$4 sm:$0xff]  }
 0x178   :  { %v513_v30 = vadd.f32 %v512_v49, %v511_v15  ;;  %v3669_v57 = vld [vmem:[%s5462_s4 + $0x45c] ss:$24 sps:$4 sm:$0xff]   ;;  %v3667_v28 = vld [vmem:[%s5462_s4 + $0x458] ss:$24 sps:$4 sm:$0xff]   ;;  %v5071_v14 = vld [vmem:[%s5467_s8 + $0x8] sm:$0xff] }
 0x179   :  { %v3763_v15 = vld [vmem:[%s5466_s6 + $0x10] ss:$24 sps:$4 sm:$0xff]   ;;  %v3765_v49 = vld [vmem:[%s5466_s6 + $0x14] ss:$24 sps:$4 sm:$0xff]   ;;  %v3795_v40 = vld [vmem:[%s5466_s6 + $0x104] ss:$24 sps:$4 sm:$0xff]  }
 0x17a   :  { %v515_v3 = vadd.f32 %v514_v8, %v513_v30  ;;  %v3672_v30 = vld [vmem:[%s5462_s4 + $0x48c] ss:$24 sps:$4 sm:$0xff]   ;;  %2915 = vmatprep.subr.bf16.mxu0 %v3765_v49  ;;  %v3670_v8 = vld [vmem:[%s5462_s4 + $0x488] ss:$24 sps:$4 sm:$0xff]   ;;  %v3687_v7 = vld [vmem:[%s5462_s4 + $0x57c] ss:$24 sps:$4 sm:$0xff]  }
 0x17b   :  { %2916 = vmatpush1.bf16.msra.mxu0 %v3763_v15  ;;  %v3799_v0 = vld [vmem:[%s5466_s6 + $0x130] ss:$24 sps:$4 sm:$0xff]   ;;  %v3801_v1 = vld [vmem:[%s5466_s6 + $0x134] ss:$24 sps:$4 sm:$0xff]   ;;  %v3819_v24 = vld [vmem:[%s5466_s6 + $0x1c4] ss:$24 sps:$4 sm:$0xff]  }
 0x17c   :  { %v517_v37 = vadd.f32 %v516_v38, %v515_v3  ;;  %v3769_v3 = vld [vmem:[%s5466_s6 + $0x40] ss:$24 sps:$4 sm:$0xff]   ;;  %v3771_v38 = vld [vmem:[%s5466_s6 + $0x44] ss:$24 sps:$4 sm:$0xff]   ;;  %v3811_v17 = vld [vmem:[%s5466_s6 + $0x190] ss:$24 sps:$4 sm:$0xff]  }
 0x17d   :  { %2917 = vmatprep.subr.bf16.mxu0 %v3771_v38  ;;  %v3691_v63 = vld [vmem:[%s5462_s4 + $0x5d8] ss:$24 sps:$4 sm:$0xff]   ;;  %v3813_v20 = vld [vmem:[%s5466_s6 + $0x194] ss:$24 sps:$4 sm:$0xff]   ;;  %v3699_v36 = vld [vmem:[%s5462_s4 + $0x344] ss:$24 sps:$4 sm:$0xff]  }
 0x17e   :  { %v519_v61 = vadd.f32 %v518_v43, %v517_v37  ;;  %v3675_v37 = vld [vmem:[%s5462_s4 + $0x4bc] ss:$24 sps:$4 sm:$0xff]   ;;  %v3673_v43 = vld [vmem:[%s5462_s4 + $0x4b8] ss:$24 sps:$4 sm:$0xff]  }
 0x17f   :  { %2918 = vmatpush1.bf16.msra.mxu0 %v3769_v3  ;;  %v3696_v32 = vld [vmem:[%s5462_s4 + $0x314] ss:$24 sps:$4 sm:$0xff]   ;;  %v3697_v59 = vld [vmem:[%s5462_s4 + $0x340] ss:$24 sps:$4 sm:$0xff]   ;;  %v3823_v56 = vld [vmem:[%s5466_s6 + $0x1f0] ss:$24 sps:$4 sm:$0xff]  }
 0x180   :  { %v521_v29 = vadd.f32 %v520_v44, %v519_v61  ;;  %v3775_v61 = vld [vmem:[%s5466_s6 + $0x70] ss:$24 sps:$4 sm:$0xff]   ;;  %v3777_v44 = vld [vmem:[%s5466_s6 + $0x74] ss:$24 sps:$4 sm:$0xff]   ;;  %v3711_v15 = vld [vmem:[%s5462_s4 + $0x404] ss:$24 sps:$4 sm:$0xff]  }
 0x181   :  { %2919 = vmatprep.subr.bf16.mxu0 %v3777_v44  ;;  %v3825_v51 = vld [vmem:[%s5466_s6 + $0x1f4] ss:$24 sps:$4 sm:$0xff]   ;;  %v3709_v3 = vld [vmem:[%s5462_s4 + $0x400] ss:$24 sps:$4 sm:$0xff]   ;;  %v3847_v44 = vld [vmem:[%s5466_s6 + $0x2b0] ss:$24 sps:$4 sm:$0xff]  }
 0x182   :  { %v523_v4 = vadd.f32 %v522_v45, %v521_v29  ;;  %v3678_v29 = vld [vmem:[%s5462_s4 + $0x4ec] ss:$24 sps:$4 sm:$0xff]   ;;  %v3676_v45 = vld [vmem:[%s5462_s4 + $0x4e8] ss:$24 sps:$4 sm:$0xff]  }
 0x183   :  { %2920 = vmatpush1.bf16.msra.mxu0 %v3775_v61 }
 0x184   :  { %v525_v50 = vadd.f32 %v524_v33, %v523_v4  ;;  %v3781_v4 = vld [vmem:[%s5466_s6 + $0xa0] ss:$24 sps:$4 sm:$0xff]   ;;  %v3783_v33 = vld [vmem:[%s5466_s6 + $0xa4] ss:$24 sps:$4 sm:$0xff]  }
 0x185   :  { %2921 = vmatprep.subr.bf16.mxu0 %v3783_v33  ;;  %v3853_v33 = vld [vmem:[%s5466_s6 + $0x2e0] ss:$24 sps:$4 sm:$0xff]  }
 0x186   :  { %v527_v10 = vadd.f32 %v526_v52, %v525_v50  ;;  %v3681_v50 = vld [vmem:[%s5462_s4 + $0x51c] ss:$24 sps:$4 sm:$0xff]   ;;  %v3679_v52 = vld [vmem:[%s5462_s4 + $0x518] ss:$24 sps:$4 sm:$0xff]  }
 0x187   :  { %2922 = vmatpush1.bf16.msra.mxu0 %v3781_v4  ;;  %v3855_v4 = vld [vmem:[%s5466_s6 + $0x2e4] ss:$24 sps:$4 sm:$0xff]  }
 0x188   :  { %v529_v13 = vadd.f32 %v528_v46, %v527_v10  ;;  %v3787_v10 = vld [vmem:[%s5466_s6 + $0xd0] ss:$24 sps:$4 sm:$0xff]   ;;  %v3789_v46 = vld [vmem:[%s5466_s6 + $0xd4] ss:$24 sps:$4 sm:$0xff]  }
 0x189   :  { %2923 = vmatprep.subr.bf16.mxu0 %v3789_v46 }
 0x18a   :  { %v531_v55 = vadd.f32 %v530_v58, %v529_v13  ;;  %v3684_v13 = vld [vmem:[%s5462_s4 + $0x54c] ss:$24 sps:$4 sm:$0xff]   ;;  %v3682_v58 = vld [vmem:[%s5462_s4 + $0x548] ss:$24 sps:$4 sm:$0xff]  }
 0x18b   :  { %2924 = vmatpush1.bf16.msra.mxu0 %v3787_v10  ;;  %v3720_v10 = vld [vmem:[%s5462_s4 + $0x494] ss:$24 sps:$4 sm:$0xff]  }
 0x18c   :  { %v533_v21 = vadd.f32 %v532_v48, %v531_v55  ;;  %v3793_v55 = vld [vmem:[%s5466_s6 + $0x100] ss:$24 sps:$4 sm:$0xff]   ;;  %2925 = vmatprep.subr.bf16.mxu0 %v3795_v40 }
 0x18d   :  { %v3685_v48 = vld [vmem:[%s5462_s4 + $0x578] ss:$24 sps:$4 sm:$0xff]  }
 0x18e   :  { %v535_v62 = vadd.f32 %v534_v23, %v533_v21  ;;  %v3690_v21 = vld [vmem:[%s5462_s4 + $0x5ac] ss:$24 sps:$4 sm:$0xff]   ;;  %v3688_v23 = vld [vmem:[%s5462_s4 + $0x5a8] ss:$24 sps:$4 sm:$0xff]  }
 0x18f   :  { %2926 = vmatpush1.bf16.msra.mxu0 %v3793_v55  ;;  %v3723_v55 = vld [vmem:[%s5462_s4 + $0x4c4] ss:$24 sps:$4 sm:$0xff]  }
 0x190   :  { %3023 = vmatmul.mubr.msk.f32.vlgmr.msra.gmra.mrb[2].mxu1 %vm53_vm1, %v535_v62  ;;  %2927 = vmatprep.subr.bf16.mxu0 %v3801_v1  ;;  %v3726_v1 = vld [vmem:[%s5462_s4 + $0x4f4] ss:$24 sps:$4 sm:$0xff]  }
 0x191   :  { %3416 = vmatpush1.bf16.msra.mxu1 %v3415_v16  ;;  %898 = vmatprep.mubr.f32.mxu1 %v3944_v6  ;;  %v3805_v16 = vld [vmem:[%s5466_s6 + $0x160] ss:$24 sps:$4 sm:$0xff]  }
 0x192   :  { %3418 = vmatprep.subr.bf16.mxu1 %v3417_v41  ;;  %v3693_v41 = vld [vmem:[%s5462_s4 + $0x5dc] ss:$24 sps:$4 sm:$0xff]  }
 0x193   :  { %2928 = vmatpush1.bf16.msra.mxu0 %v3799_v0  ;;  %v3721_v0 = vld [vmem:[%s5462_s4 + $0x4c0] ss:$24 sps:$4 sm:$0xff]  }
 0x195   :  { %3420 = vmatpush1.bf16.msra.mxu1 %v3419_v47  ;;  %v3694_v47 = vld [vmem:[%s5462_s4 + $0x310] ss:$24 sps:$4 sm:$0xff]  }
 0x196   :  { %3422 = vmatprep.subr.bf16.mxu1 %v3421_v22  ;;  %v3817_v22 = vld [vmem:[%s5466_s6 + $0x1c0] ss:$24 sps:$4 sm:$0xff]  }
 0x198   :  { %3024 = vmatmul.mubr.msk.f32.vlgmr.msra.gmra.mrb[4].mxu1 %vm53_vm1, %v535_v62 }
 0x199   :  { %3424 = vmatpush1.bf16.msra.mxu1 %v3423_v27  ;;  %969 = vmatprep.mubr.f32.mxu1 %v3944_v6  ;;  %v3649_v6 = vld [vmem:[%s5462_s4 + $0x338] ss:$24 sps:$4 sm:$0xff]   ;;  %v5079_v27 = vpack.c.bf16 %v5071_v14, %v5071_v14 }
 0x19a   :  { %3426 = vmatprep.subr.bf16.mxu1 %v3425_v60  ;;  %v5082_v60 = vpop.f32.mrb[32].mxu0 }
 0x19b   :  { %2947 = vmatprep.mubr.bf16.mxu0 %v5079_v27 }
 0x19d   :  { %3428 = vmatpush1.bf16.msra.mxu1 %v3427_v18  ;;  %v3702_v18 = vld [vmem:[%s5462_s4 + $0x374] ss:$24 sps:$4 sm:$0xff]  }
 0x19e   :  { %2059 = vmatprep.subr.bf16.mxu1 %v3648_v2  ;;  %v5093_v2 = vpop.f32.mrb[33].mxu0 }
 0x1a0   :  { %3025 = vmatmul.mubr.msk.f32.vlgmr.msra.gmra.mrb[6].mxu1 %vm53_vm1, %v535_v62  ;;  %v3807_v62 = vld [vmem:[%s5466_s6 + $0x164] ss:$24 sps:$4 sm:$0xff]  }
 0x1a1   :  { %2060 = vmatpush1.bf16.msra.mxu1 %v3646_v12  ;;  %2091 = vmatprep.mubr.bf16.mxu1 %v4317_v31 }
 0x1a2   :  { %2061 = vmatprep.subr.bf16.mxu1 %v3651_v19  ;;  %2929 = vmatprep.subr.bf16.mxu0 %v3807_v62  ;;  %v3700_v19 = vld [vmem:[%s5462_s4 + $0x370] ss:$24 sps:$4 sm:$0xff]   ;;  %v3732_v62 = vld [vmem:[%s5462_s4 + $0x554] ss:$24 sps:$4 sm:$0xff]  }
 0x1a3   :  { %2930 = vmatpush1.bf16.msra.mxu0 %v3805_v16  ;;  %v3727_v16 = vld [vmem:[%s5462_s4 + $0x520] ss:$24 sps:$4 sm:$0xff]  }
 0x1a4   :  { %2931 = vmatprep.subr.bf16.mxu0 %v3813_v20  ;;  %v3738_v20 = vld [vmem:[%s5462_s4 + $0x5b4] ss:$24 sps:$4 sm:$0xff]  }
 0x1a5   :  { %2062 = vmatpush1.bf16.msra.mxu1 %v3649_v6 }
 0x1a6   :  { %2063 = vmatprep.subr.bf16.mxu1 %v3654_v26  ;;  %v3705_v26 = vld [vmem:[%s5462_s4 + $0x3a4] ss:$24 sps:$4 sm:$0xff]  }
 0x1a7   :  { %2932 = vmatpush1.bf16.msra.mxu0 %v3811_v17  ;;  %v3733_v17 = vld [vmem:[%s5462_s4 + $0x580] ss:$24 sps:$4 sm:$0xff]  }
 0x1a8   :  { %2933 = vmatprep.subr.bf16.mxu0 %v3819_v24  ;;  %v3744_v24 = vld [vmem:[%s5466_s6 + $0x4] ss:$24 sps:$4 sm:$0xff]  }
 0x1a9   :  { %2064 = vmatpush1.bf16.msra.mxu1 %v3652_v34  ;;  %v3829_v34 = vld [vmem:[%s5466_s6 + $0x220] ss:$24 sps:$4 sm:$0xff]  }
 0x1aa   :  { %2065 = vmatprep.subr.bf16.mxu1 %v3657_v42  ;;  %v3831_v42 = vld [vmem:[%s5466_s6 + $0x224] ss:$24 sps:$4 sm:$0xff]  }
 0x1ab   :  { %2934 = vmatpush1.bf16.msra.mxu0 %v3817_v22  ;;  %v3739_v22 = vld [vmem:[%s5462_s4 + $0x5e0] ss:$24 sps:$4 sm:$0xff]  }
 0x1ac   :  { %2935 = vmatprep.subr.bf16.mxu0 %v3825_v51  ;;  %v3750_v51 = vld [vmem:[%s5466_s6 + $0x64] ss:$24 sps:$4 sm:$0xff]  }
 0x1ad   :  { %2066 = vmatpush1.bf16.msra.mxu1 %v3655_v54 }
 0x1ae   :  { %2067 = vmatprep.subr.bf16.mxu1 %v3660_v11  ;;  %v3703_v11 = vld [vmem:[%s5462_s4 + $0x3a0] ss:$24 sps:$4 sm:$0xff]  }
 0x1af   :  { %2936 = vmatpush1.bf16.msra.mxu0 %v3823_v56  ;;  %v3745_v56 = vld [vmem:[%s5466_s6 + $0x30] ss:$24 sps:$4 sm:$0xff]  }
 0x1b0   :  { %2937 = vmatprep.subr.bf16.mxu0 %v3831_v42  ;;  %v3762_v42 = vld [vmem:[%s5466_s6 + $0x124] ss:$24 sps:$4 sm:$0xff]  }
 0x1b1   :  { %2068 = vmatpush1.bf16.msra.mxu1 %v3658_v25 }
 0x1b2   :  { %2069 = vmatprep.subr.bf16.mxu1 %v3663_v5  ;;  %v3708_v5 = vld [vmem:[%s5462_s4 + $0x3d4] ss:$24 sps:$4 sm:$0xff]  }
 0x1b3   :  { %2938 = vmatpush1.bf16.msra.mxu0 %v3829_v34  ;;  %v3757_v34 = vld [vmem:[%s5466_s6 + $0xf0] ss:$24 sps:$4 sm:$0xff]  }
 0x1b5   :  { %2070 = vmatpush1.bf16.msra.mxu1 %v3661_v39 }
 0x1b6   :  { %2071 = vmatprep.subr.bf16.mxu1 %v3666_v53  ;;  %v3835_v53 = vld [vmem:[%s5466_s6 + $0x250] ss:$24 sps:$4 sm:$0xff]  }
 0x1b9   :  { %2072 = vmatpush1.bf16.msra.mxu1 %v3664_v9  ;;  %v3837_v9 = vld [vmem:[%s5466_s6 + $0x254] ss:$24 sps:$4 sm:$0xff]  }
 0x1ba   :  { %2073 = vmatprep.subr.bf16.mxu1 %v3669_v57  ;;  %2939 = vmatprep.subr.bf16.mxu0 %v3837_v9  ;;  %v3780_v9 = vld [vmem:[%s5466_s6 + $0x1b4] ss:$24 sps:$4 sm:$0xff]  }
 0x1bb   :  { %2940 = vmatpush1.bf16.msra.mxu0 %v3835_v53  ;;  %v3772_v53 = vld [vmem:[%s5466_s6 + $0x180] ss:$24 sps:$4 sm:$0xff]  }
 0x1bd   :  { %2074 = vmatpush1.bf16.msra.mxu1 %v3667_v28  ;;  %v3706_v28 = vld [vmem:[%s5462_s4 + $0x3d0] ss:$24 sps:$4 sm:$0xff]  }
 0x1be   :  { %2075 = vmatprep.subr.bf16.mxu1 %v3672_v30  ;;  %v3841_v30 = vld [vmem:[%s5466_s6 + $0x280] ss:$24 sps:$4 sm:$0xff]  }
 0x1c1   :  { %2076 = vmatpush1.bf16.msra.mxu1 %v3670_v8  ;;  %v3843_v8 = vld [vmem:[%s5466_s6 + $0x284] ss:$24 sps:$4 sm:$0xff]  }
 0x1c2   :  { %2077 = vmatprep.subr.bf16.mxu1 %v3675_v37  ;;  %v3849_v37 = vld [vmem:[%s5466_s6 + $0x2b4] ss:$24 sps:$4 sm:$0xff]   ;;  %2941 = vmatprep.subr.bf16.mxu0 %v3843_v8 }
 0x1c3   :  { %2942 = vmatpush1.bf16.msra.mxu0 %v3841_v30  ;;  %v3784_v30 = vld [vmem:[%s5466_s6 + $0x1e0] ss:$24 sps:$4 sm:$0xff]   ;;  %v3792_v8 = vld [vmem:[%s5466_s6 + $0x214] ss:$24 sps:$4 sm:$0xff]  }
 0x1c4   :  { %2943 = vmatprep.subr.bf16.mxu0 %v3849_v37  ;;  %v3796_v37 = vld [vmem:[%s5466_s6 + $0x240] ss:$24 sps:$4 sm:$0xff]  }
 0x1c5   :  { %2078 = vmatpush1.bf16.msra.mxu1 %v3673_v43  ;;  %v3714_v43 = vld [vmem:[%s5462_s4 + $0x434] ss:$24 sps:$4 sm:$0xff]  }
 0x1c6   :  { %2079 = vmatprep.subr.bf16.mxu1 %v3678_v29  ;;  %v3712_v29 = vld [vmem:[%s5462_s4 + $0x430] ss:$24 sps:$4 sm:$0xff]  }
 0x1c7   :  { %2944 = vmatpush1.bf16.msra.mxu0 %v3847_v44  ;;  %v3810_v44 = vld [vmem:[%s5466_s6 + $0x2a4] ss:$24 sps:$4 sm:$0xff]  }
 0x1c8   :  { %2945 = vmatprep.subr.bf16.mxu0 %v3855_v4  ;;  %v3814_v4 = vld [vmem:[%s5466_s6 + $0x2d0] ss:$24 sps:$4 sm:$0xff]  }
 0x1c9   :  { %2080 = vmatpush1.bf16.msra.mxu1 %v3676_v45  ;;  %v3717_v45 = vld [vmem:[%s5462_s4 + $0x464] ss:$24 sps:$4 sm:$0xff]  }
 0x1ca   :  { %2081 = vmatprep.subr.bf16.mxu1 %v3681_v50  ;;  %v3715_v50 = vld [vmem:[%s5462_s4 + $0x460] ss:$24 sps:$4 sm:$0xff]  }
 0x1cb   :  { %2946 = vmatpush1.bf16.msra.mxu0 %v3853_v33  ;;  %v3822_v33 = vld [vmem:[%s5466_s6 + $0xc] ss:$24 sps:$4 sm:$0xff]  }
 0x1cd   :  { %2082 = vmatpush1.bf16.msra.mxu1 %v3679_v52  ;;  %v5170_v52 = vld [vmem:[%s5467_s8] sm:$0xff] }
 0x1ce   :  { %2083 = vmatprep.subr.bf16.mxu1 %v3684_v13  ;;  %v5177_v46 = vpack.c.bf16 %v5170_v52, %v5170_v52  ;;  %v3718_v13 = vld [vmem:[%s5462_s4 + $0x490] ss:$24 sps:$4 sm:$0xff]  }
 0x1d0   :  { %2948 = vmatmul.mubr.bf16.vlgmr.msra.gmra.mrb[48].mxu0 %v5177_v46 }
 0x1d1   :  { %2084 = vmatpush1.bf16.msra.mxu1 %v3682_v58 }
 0x1d2   :  { %2085 = vmatprep.subr.bf16.mxu1 %v3687_v7 }
 0x1d5   :  { %2086 = vmatpush1.bf16.msra.mxu1 %v3685_v48 }
 0x1d6   :  { %2087 = vmatprep.subr.bf16.mxu1 %v3690_v21  ;;  %v3724_v21 = vld [vmem:[%s5462_s4 + $0x4f0] ss:$24 sps:$4 sm:$0xff]  }
 0x1d9   :  { %2088 = vmatpush1.bf16.msra.mxu1 %v3688_v23  ;;  %v3729_v23 = vld [vmem:[%s5462_s4 + $0x524] ss:$24 sps:$4 sm:$0xff]  }
 0x1da   :  { %2089 = vmatprep.subr.bf16.mxu1 %v3693_v41  ;;  %v3730_v41 = vld [vmem:[%s5462_s4 + $0x550] ss:$24 sps:$4 sm:$0xff]  }
 0x1dd   :  { %2090 = vmatpush1.bf16.msra.mxu1 %v3691_v63  ;;  %v3735_v63 = vld [vmem:[%s5462_s4 + $0x584] ss:$24 sps:$4 sm:$0xff]  }
 0x1de   :  { %2141 = vmatprep.subr.bf16.mxu1 %v3696_v32  ;;  %v3736_v32 = vld [vmem:[%s5462_s4 + $0x5b0] ss:$24 sps:$4 sm:$0xff]  }
 0x1e0   :  { %2092 = vmatmul.mubr.bf16.vlgmr.msra.gmra.mrb[8].mxu1 %v4328_v35 }
 0x1e1   :  { %2142 = vmatpush1.bf16.msra.mxu1 %v3694_v47  ;;  %2173 = vmatprep.mubr.bf16.mxu1 %v4317_v31  ;;  %v1974_v31 = vpop.f32.mrb[34].mxu0  ;;  %v3741_v47 = vld [vmem:[%s5462_s4 + $0x5e4] ss:$24 sps:$4 sm:$0xff]  }
 0x1e2   :  { %2143 = vmatprep.subr.bf16.mxu1 %v3699_v36  ;;  %v1975_v12 = vpop.f32.mrb[35].mxu0  ;;  %v3742_v36 = vld [vmem:[%s5466_s6] ss:$24 sps:$4 sm:$0xff]   ;;  %v3751_v31 = vld [vmem:[%s5466_s6 + $0x90] ss:$24 sps:$4 sm:$0xff]  }
 0x1e3   :  { %v5099_v6 = vpop.f32.mrb[36].mxu0  ;;  %v3756_v12 = vld [vmem:[%s5466_s6 + $0xc4] ss:$24 sps:$4 sm:$0xff]  }
 0x1e4   :  { %v5110_v54 = vpop.f32.mrb[37].mxu0 }
 0x1e5   :  { %2144 = vmatpush1.bf16.msra.mxu1 %v3697_v59  ;;  %v2015_v25 = vpop.f32.mrb[38].mxu0  ;;  %v3747_v59 = vld [vmem:[%s5466_s6 + $0x34] ss:$24 sps:$4 sm:$0xff]  }
 0x1e6   :  { %2145 = vmatprep.subr.bf16.mxu1 %v3702_v18  ;;  %v2016_v39 = vpop.f32.mrb[39].mxu0  ;;  %v3748_v18 = vld [vmem:[%s5466_s6 + $0x60] ss:$24 sps:$4 sm:$0xff]   ;;  %v3768_v25 = vld [vmem:[%s5466_s6 + $0x154] ss:$24 sps:$4 sm:$0xff]  }
 0x1e7   :  { %v5124_v57 = vpop.f32.mrb[40].mxu0  ;;  %v3774_v39 = vld [vmem:[%s5466_s6 + $0x184] ss:$24 sps:$4 sm:$0xff]  }
 0x1e8   :  { %v5132_v49 = vpop.f32.mrb[41].mxu0 }
 0x1e9   :  { %2146 = vmatpush1.bf16.msra.mxu1 %v3700_v19  ;;  %v2056_v38 = vpop.f32.mrb[42].mxu0  ;;  %v3754_v19 = vld [vmem:[%s5466_s6 + $0xc0] ss:$24 sps:$4 sm:$0xff]  }
 0x1ea   :  { %2147 = vmatprep.subr.bf16.mxu1 %v3705_v26  ;;  %v2057_v61 = vpop.f32.mrb[43].mxu0  ;;  %v3759_v26 = vld [vmem:[%s5466_s6 + $0xf4] ss:$24 sps:$4 sm:$0xff]   ;;  %v3798_v38 = vld [vmem:[%s5466_s6 + $0x244] ss:$24 sps:$4 sm:$0xff]  }
 0x1eb   :  { %v3802_v61 = vld [vmem:[%s5466_s6 + $0x270] ss:$24 sps:$4 sm:$0xff]  }
 0x1ed   :  { %2148 = vmatpush1.bf16.msra.mxu1 %v3703_v11  ;;  %v3760_v11 = vld [vmem:[%s5466_s6 + $0x120] ss:$24 sps:$4 sm:$0xff]  }
 0x1ee   :  { %2149 = vmatprep.subr.bf16.mxu1 %v3708_v5  ;;  %v3766_v5 = vld [vmem:[%s5466_s6 + $0x150] ss:$24 sps:$4 sm:$0xff]  }
 0x1f1   :  { %2150 = vmatpush1.bf16.msra.mxu1 %v3706_v28  ;;  %v3778_v28 = vld [vmem:[%s5466_s6 + $0x1b0] ss:$24 sps:$4 sm:$0xff]  }
 0x1f2   :  { %2151 = vmatprep.subr.bf16.mxu1 %v3711_v15  ;;  %v3786_v15 = vld [vmem:[%s5466_s6 + $0x1e4] ss:$24 sps:$4 sm:$0xff]  }
 0x1f5   :  { %2152 = vmatpush1.bf16.msra.mxu1 %v3709_v3  ;;  %v3790_v3 = vld [vmem:[%s5466_s6 + $0x210] ss:$24 sps:$4 sm:$0xff]  }
 0x1f6   :  { %2153 = vmatprep.subr.bf16.mxu1 %v3714_v43  ;;  %v3804_v43 = vld [vmem:[%s5466_s6 + $0x274] ss:$24 sps:$4 sm:$0xff]  }
 0x1f9   :  { %2154 = vmatpush1.bf16.msra.mxu1 %v3712_v29  ;;  %v3808_v29 = vld [vmem:[%s5466_s6 + $0x2a0] ss:$24 sps:$4 sm:$0xff]  }
 0x1fa   :  { %2155 = vmatprep.subr.bf16.mxu1 %v3717_v45  ;;  %v5182_v58 = vpop.f32.mrb[44].mxu0  ;;  %v3816_v45 = vld [vmem:[%s5466_s6 + $0x2d4] ss:$24 sps:$4 sm:$0xff]  }
 0x1fb   :  { %v5187_v40 = vpop.f32.mrb[45].mxu0 }
 0x1fc   :  { %v2138_v7 = vpop.f32.mrb[46].mxu0 }
 0x1fd   :  { %2156 = vmatpush1.bf16.msra.mxu1 %v3715_v50  ;;  %v2139_v48 = vpop.f32.mrb[47].mxu0  ;;  %v3820_v50 = vld [vmem:[%s5466_s6 + $0x8] ss:$24 sps:$4 sm:$0xff]  }
 0x1fe   :  { %2157 = vmatprep.subr.bf16.mxu1 %v3720_v10  ;;  %v3828_v10 = vld [vmem:[%s5466_s6 + $0x3c] ss:$24 sps:$4 sm:$0xff]  }
 0x201   :  { %2158 = vmatpush1.bf16.msra.mxu1 %v3718_v13  ;;  %v3826_v13 = vld [vmem:[%s5466_s6 + $0x38] ss:$24 sps:$4 sm:$0xff]  }
 0x202   :  { %2159 = vmatprep.subr.bf16.mxu1 %v3723_v55  ;;  %v3834_v55 = vld [vmem:[%s5466_s6 + $0x6c] ss:$24 sps:$4 sm:$0xff]  }
 0x205   :  { %2160 = vmatpush1.bf16.msra.mxu1 %v3721_v0 }
 0x206   :  { %2161 = vmatprep.subr.bf16.mxu1 %v3726_v1 }
 0x209   :  { %2162 = vmatpush1.bf16.msra.mxu1 %v3724_v21  ;;  %v3832_v21 = vld [vmem:[%s5466_s6 + $0x68] ss:$24 sps:$4 sm:$0xff]  }
 0x20a   :  { %2163 = vmatprep.subr.bf16.mxu1 %v3729_v23 }
 0x20d   :  { %2164 = vmatpush1.bf16.msra.mxu1 %v3727_v16 }
 0x20e   :  { %2165 = vmatprep.subr.bf16.mxu1 %v3732_v62 }
 0x211   :  { %2166 = vmatpush1.bf16.msra.mxu1 %v3730_v41 }
 0x212   :  { %2167 = vmatprep.subr.bf16.mxu1 %v3735_v63 }
 0x215   :  { %2168 = vmatpush1.bf16.msra.mxu1 %v3733_v17  ;;  %v3852_v17 = vld [vmem:[%s5466_s6 + $0xfc] ss:$24 sps:$4 sm:$0xff]  }
 0x216   :  { %2169 = vmatprep.subr.bf16.mxu1 %v3738_v20 }
 0x219   :  { %2170 = vmatpush1.bf16.msra.mxu1 %v3736_v32 }
 0x21a   :  { %2171 = vmatprep.subr.bf16.mxu1 %v3741_v47 }
 0x21d   :  { %2172 = vmatpush1.bf16.msra.mxu1 %v3739_v22 }
 0x21e   :  { %2833 = vmatprep.subr.bf16.mxu1 %v3744_v24  ;;  %v3856_v24 = vld [vmem:[%s5466_s6 + $0x128] ss:$24 sps:$4 sm:$0xff]  }
 0x220   :  { %2174 = vmatmul.mubr.bf16.vlgmr.msra.gmra.mrb[12].mxu1 %v4328_v35  ;;  %v3753_v35 = vld [vmem:[%s5466_s6 + $0x94] ss:$24 sps:$4 sm:$0xff]  }
 0x221   :  { %2834 = vmatpush1.bf16.msra.mxu1 %v3742_v36  ;;  %2865 = vmatprep.mubr.bf16.mxu1 %v5079_v27  ;;  %v3861_v36 = vld [vmem:[%s5466_s6 + $0x15c] ss:$24 sps:$4 sm:$0xff]  }
 0x222   :  { %2835 = vmatprep.subr.bf16.mxu1 %v3747_v59  ;;  %v3859_v59 = vld [vmem:[%s5466_s6 + $0x158] ss:$24 sps:$4 sm:$0xff]  }
 0x225   :  { %2836 = vmatpush1.bf16.msra.mxu1 %v3745_v56  ;;  %v3867_v56 = vld [vmem:[%s5466_s6 + $0x1bc] ss:$24 sps:$4 sm:$0xff]  }
 0x226   :  { %2837 = vmatprep.subr.bf16.mxu1 %v3750_v51  ;;  %v3865_v51 = vld [vmem:[%s5466_s6 + $0x1b8] ss:$24 sps:$4 sm:$0xff]  }
 0x229   :  { %2838 = vmatpush1.bf16.msra.mxu1 %v3748_v18  ;;  %v3870_v18 = vld [vmem:[%s5466_s6 + $0x1ec] ss:$24 sps:$4 sm:$0xff]  }
 0x22a   :  { %2839 = vmatprep.subr.bf16.mxu1 %v3753_v35  ;;  %v3868_v35 = vld [vmem:[%s5466_s6 + $0x1e8] ss:$24 sps:$4 sm:$0xff]  }
 0x22d   :  { %2840 = vmatpush1.bf16.msra.mxu1 %v3751_v31  ;;  %v3873_v31 = vld [vmem:[%s5466_s6 + $0x21c] ss:$24 sps:$4 sm:$0xff]  }
 0x22e   :  { %2841 = vmatprep.subr.bf16.mxu1 %v3756_v12  ;;  %v3871_v12 = vld [vmem:[%s5466_s6 + $0x218] ss:$24 sps:$4 sm:$0xff]  }
 0x231   :  { %2842 = vmatpush1.bf16.msra.mxu1 %v3754_v19  ;;  %v3876_v19 = vld [vmem:[%s5466_s6 + $0x24c] ss:$24 sps:$4 sm:$0xff]  }
 0x232   :  { %2843 = vmatprep.subr.bf16.mxu1 %v3759_v26  ;;  %v3874_v26 = vld [vmem:[%s5466_s6 + $0x248] ss:$24 sps:$4 sm:$0xff]  }
 0x235   :  { %2844 = vmatpush1.bf16.msra.mxu1 %v3757_v34  ;;  %v3879_v34 = vld [vmem:[%s5466_s6 + $0x27c] ss:$24 sps:$4 sm:$0xff]  }
 0x236   :  { %2845 = vmatprep.subr.bf16.mxu1 %v3762_v42  ;;  %v3877_v42 = vld [vmem:[%s5466_s6 + $0x278] ss:$24 sps:$4 sm:$0xff]  }
 0x239   :  { %2846 = vmatpush1.bf16.msra.mxu1 %v3760_v11  ;;  %v3882_v11 = vld [vmem:[%s5466_s6 + $0x2ac] ss:$24 sps:$4 sm:$0xff]  }
 0x23a   :  { %2847 = vmatprep.subr.bf16.mxu1 %v3768_v25  ;;  %v3880_v25 = vld [vmem:[%s5466_s6 + $0x2a8] ss:$24 sps:$4 sm:$0xff]  }
 0x23d   :  { %2848 = vmatpush1.bf16.msra.mxu1 %v3766_v5  ;;  %v3885_v5 = vld [vmem:[%s5466_s6 + $0x2dc] ss:$24 sps:$4 sm:$0xff]  }
 0x23e   :  { %2849 = vmatprep.subr.bf16.mxu1 %v3774_v39  ;;  %v3883_v39 = vld [vmem:[%s5466_s6 + $0x2d8] ss:$24 sps:$4 sm:$0xff]  }
 0x241   :  { %2850 = vmatpush1.bf16.msra.mxu1 %v3772_v53 }
 0x242   :  { %2851 = vmatprep.subr.bf16.mxu1 %v3780_v9 }
 0x245   :  { %2852 = vmatpush1.bf16.msra.mxu1 %v3778_v28 }
 0x246   :  { %2853 = vmatprep.subr.bf16.mxu1 %v3786_v15 }
 0x249   :  { %2854 = vmatpush1.bf16.msra.mxu1 %v3784_v30 }
 0x24a   :  { %2855 = vmatprep.subr.bf16.mxu1 %v3792_v8 }
 0x24d   :  { %2856 = vmatpush1.bf16.msra.mxu1 %v3790_v3 }
 0x24e   :  { %2857 = vmatprep.subr.bf16.mxu1 %v3798_v38 }
 0x251   :  { %2858 = vmatpush1.bf16.msra.mxu1 %v3796_v37 }
 0x252   :  { %2859 = vmatprep.subr.bf16.mxu1 %v3804_v43 }
 0x255   :  { %2860 = vmatpush1.bf16.msra.mxu1 %v3802_v61  ;;  %v2184_v61 = vlaneseq }
 0x256   :  { %2861 = vmatprep.subr.bf16.mxu1 %v3810_v44 }
 0x257   :  { %v2185_v44 = vshrl.u32 %v2184_v61, 7 }
 0x259   :  { %2862 = vmatpush1.bf16.msra.mxu1 %v3808_v29  ;;  %v2186_v29 = vsub.s32 0, %v2185_v44 }
 0x25a   :  { %2863 = vmatprep.subr.bf16.mxu1 %v3816_v45  ;;  %v2182_v45 = vld [vmem:[%s5468_s7] ss:$2 sm:$0x3f] }
 0x25d   :  { %2864 = vmatpush1.bf16.msra.mxu1 %v3814_v4  ;;  %v2190_v4 = vsub.s32 1, %v2185_v44 }
 0x25e   :  { %2874 = vmatprep.subr.bf16.mxu1 %v3822_v33  ;;  %v2187_v33 = vrot.slane %v2182_v45, %v2186_v29 }
 0x260   :  { %2866 = vmatmul.mubr.bf16.vlgmr.msra.gmra.mrb[16].mxu1 %v5177_v46 }
 0x261   :  { %2875 = vmatpush1.bf16.msra.mxu1 %v3820_v50  ;;  %2906 = vmatprep.mubr.bf16.mxu1 %v5079_v27  ;;  %v3840_v27 = vld [vmem:[%s5466_s6 + $0x9c] ss:$24 sps:$4 sm:$0xff]   ;;  %v3218_v50 = vld [vmem:[%s5468_s7 + $0x1] ss:$2 sm:$0x3f] }
 0x262   :  { %2876 = vmatprep.subr.bf16.mxu1 %v3828_v10 }
 0x263   :  { %v829_v7 = vpop.f32.mrb[2].mxu1 }
 0x264   :  { %v1971_v48 = vadd.f32 %v5082_v60, %v829_v7  ;;  %v831_v0 = vpop.f32.mrb[3].mxu1  ;;  %v3838_v60 = vld [vmem:[%s5466_s6 + $0x98] ss:$24 sps:$4 sm:$0xff]   ;;  %v2330_v7 = vrot.slane %v3218_v50, %v2190_v4 }
 0x265   :  { %v1973_v1 = vadd.f32 %v5093_v2, %v831_v0  ;;  %2877 = vmatpush1.bf16.msra.mxu1 %v3826_v13  ;;  %v3846_v2 = vld [vmem:[%s5466_s6 + $0xcc] ss:$24 sps:$4 sm:$0xff]   ;;  %v2326_v13 = vrot.slane %v3218_v50, %v2186_v29 }
 0x266   :  { %v5350_v23 = vadd.f32 %v5099_v6, %v1971_v48  ;;  %2878 = vmatprep.subr.bf16.mxu1 %v3834_v55 }
 0x267   :  { %v5356_v16 = vadd.f32 %v5110_v54, %v1973_v1  ;;  %v3844_v54 = vld [vmem:[%s5466_s6 + $0xc8] ss:$24 sps:$4 sm:$0xff]  }
 0x268   :  { %v2214_v10 = vadd.f32 %v2187_v33, %v5350_v23 }
 0x269   :  { %2879 = vmatpush1.bf16.msra.mxu1 %v3832_v21 }
 0x26a   :  { %2880 = vmatprep.subr.bf16.mxu1 %v3840_v27  ;;  %v3435_v48 = vadd.f32 %v2326_v13, %v2214_v10 }
 0x26b   :  { %v900_v6 = vpop.f32.mrb[4].mxu1 }
 0x26c   :  { %v5365_v62 = vadd.f32 %v5124_v57, %v900_v6  ;;  %v902_v41 = vpop.f32.mrb[5].mxu1  ;;  %v3850_v57 = vld [vmem:[%s5466_s6 + $0xf8] ss:$24 sps:$4 sm:$0xff]  }
 0x26d   :  { %v5368_v63 = vadd.f32 %v5132_v49, %v902_v41  ;;  %2881 = vmatpush1.bf16.msra.mxu1 %v3838_v60  ;;  %v3858_v49 = vld [vmem:[%s5466_s6 + $0x12c] ss:$24 sps:$4 sm:$0xff]  }
 0x26e   :  { %2882 = vmatprep.subr.bf16.mxu1 %v3846_v2 }
 0x271   :  { %2883 = vmatpush1.bf16.msra.mxu1 %v3844_v54 }
 0x272   :  { %2884 = vmatprep.subr.bf16.mxu1 %v3852_v17 }
 0x273   :  { %v971_v20 = vpop.f32.mrb[6].mxu1 }
 0x274   :  { %v2135_v32 = vadd.f32 %v5182_v58, %v971_v20  ;;  %v973_v47 = vpop.f32.mrb[7].mxu1  ;;  %v3864_v58 = vld [vmem:[%s5466_s6 + $0x18c] ss:$24 sps:$4 sm:$0xff]   ;;  %v2202_v20 = vsub.s32 4, %v2185_v44 }
 0x275   :  { %v2137_v22 = vadd.f32 %v5187_v40, %v973_v47  ;;  %2885 = vmatpush1.bf16.msra.mxu1 %v3850_v57  ;;  %v3862_v40 = vld [vmem:[%s5466_s6 + $0x188] ss:$24 sps:$4 sm:$0xff]  }
 0x276   :  { %2886 = vmatprep.subr.bf16.mxu1 %v3858_v49 }
 0x279   :  { %2887 = vmatpush1.bf16.msra.mxu1 %v3856_v24 }
 0x27a   :  { %2888 = vmatprep.subr.bf16.mxu1 %v3861_v36 }
 0x27d   :  { %2889 = vmatpush1.bf16.msra.mxu1 %v3859_v59 }
 0x27e   :  { %2890 = vmatprep.subr.bf16.mxu1 %v3864_v58 }
 0x281   :  { %2891 = vmatpush1.bf16.msra.mxu1 %v3862_v40 }
 0x282   :  { %2892 = vmatprep.subr.bf16.mxu1 %v3867_v56 }
 0x285   :  { %2893 = vmatpush1.bf16.msra.mxu1 %v3865_v51 }
 0x286   :  { %2894 = vmatprep.subr.bf16.mxu1 %v3870_v18 }
 0x289   :  { %2895 = vmatpush1.bf16.msra.mxu1 %v3868_v35 }
 0x28a   :  { %2896 = vmatprep.subr.bf16.mxu1 %v3873_v31 }
 0x28d   :  { %2897 = vmatpush1.bf16.msra.mxu1 %v3871_v12 }
 0x28e   :  { %2898 = vmatprep.subr.bf16.mxu1 %v3876_v19  ;;  %v2194_v19 = vsub.s32 2, %v2185_v44 }
 0x291   :  { %2899 = vmatpush1.bf16.msra.mxu1 %v3874_v26  ;;  %v2198_v26 = vsub.s32 3, %v2185_v44 }
 0x292   :  { %2900 = vmatprep.subr.bf16.mxu1 %v3879_v34  ;;  %v2195_v34 = vrot.slane %v2182_v45, %v2194_v19 }
 0x295   :  { %2901 = vmatpush1.bf16.msra.mxu1 %v3877_v42  ;;  %v2199_v42 = vrot.slane %v2182_v45, %v2198_v26 }
 0x296   :  { %2902 = vmatprep.subr.bf16.mxu1 %v3882_v11  ;;  %v3441_v11 = vadd.f32 %v2195_v34, %v5365_v62 }
 0x299   :  { %2903 = vmatpush1.bf16.msra.mxu1 %v3880_v25  ;;  %v2334_v25 = vrot.slane %v3218_v50, %v2194_v19 }
 0x29a   :  { %2904 = vmatprep.subr.bf16.mxu1 %v3885_v5  ;;  %v3444_v5 = vadd.f32 %v2199_v42, %v5368_v63 }
 0x29d   :  { %2905 = vmatpush1.bf16.msra.mxu1 %v3883_v39  ;;  %v2338_v39 = vrot.slane %v3218_v50, %v2198_v26 }
 0x2a0   :  { %2907 = vmatmul.mubr.bf16.vlgmr.msra.gmra.mrb[8].mxu1 %v5177_v46  ;;  %v2191_v46 = vrot.slane %v2182_v45, %v2190_v4 }
 0x2a2   :  { %v2215_v55 = vadd.f32 %v2191_v46, %v5356_v16  ;;  %v2206_v16 = vsub.s32 5, %v2185_v44 }
 0x2a3   :  { %v2949_v53 = vpop.f32.mrb[48].mxu0 }
 0x2a4   :  { %v2951_v9 = vpop.f32.mrb[49].mxu0  ;;  %v3439_v1 = vadd.f32 %v2330_v7, %v2215_v55  ;;  %v2346_v47 = vrot.slane %v3218_v50, %v2206_v16  ;;  %v2207_v36 = vrot.slane %v2182_v45, %v2206_v16 }
 0x2a5   :  { %v2953_v28 = vpop.f32.mrb[50].mxu0 }
 0x2a6   :  { %v2954_v15 = vpop.f32.mrb[51].mxu0  ;;  %v2952_v59 = vadd.f32 %v2951_v9, %v2346_v47  ;;  %v3445_v28 = vadd.f32 %v3444_v5, %v2338_v39 }
 0x2f3   :  { %v2175_v30 = vpop.f32.mrb[12].mxu1 }
 0x2f4   :  { %v2176_v8 = vadd.f32 %v2175_v30, %v2135_v32  ;;  %v2177_v3 = vpop.f32.mrb[13].mxu1  ;;  %v2342_v32 = vrot.slane %v3218_v50, %v2202_v20 }
 0x2f5   :  { %v2178_v38 = vadd.f32 %v2177_v3, %v2137_v22  ;;  %v2179_v37 = vpop.f32.mrb[14].mxu1  ;;  %v2203_v22 = vrot.slane %v2182_v45, %v2202_v20 }
 0x2f6   :  { %v2180_v43 = vpop.f32.mrb[15].mxu1  ;;  %v2950_v24 = vadd.f32 %v2949_v53, %v2342_v32  ;;  %v3442_v53 = vadd.f32 %v3441_v11, %v2334_v25 }
 0x2f7   :  { %v2218_v56 = vadd.f32 %v2203_v22, %v2176_v8  ;;  %v2219_v18 = vadd.f32 %v2207_v36, %v2178_v38 }
 0x333   :  { %v2867_v0 = vpop.f32.mrb[16].mxu1 }
 0x334   :  { %v3436_v21 = vadd.f32 %v3435_v48, %v2867_v0  ;;  %v2869_v27 = vpop.f32.mrb[17].mxu1 }
 0x335   :  { %v3440_v60 = vadd.f32 %v3439_v1, %v2869_v27  ;;  %v2871_v2 = vpop.f32.mrb[18].mxu1 }
 0x336   :  { %v3315_v6 = vmul.f32 -1.442695, %v3436_v21  ;;  %v2872_v41 = vpop.f32.mrb[19].mxu1 }
 0x337   :  { %v3316_v54 = vmul.f32 -1.442695, %v3440_v60 }
 0x338   :  { %3922 = vpow2.f32 %v3315_v6 }
 0x339   :  { %3924 = vpow2.f32 %v3316_v54 }
 0x342   :  { %v3923_v17 = vpop.eup %3922 }
 0x343   :  { %v3925_v57 = vpop.eup %3924  ;;  %v2964_v49 = vadd.f32 1.0, %v3923_v17 }
 0x344   :  { %v2965_v23 = vadd.f32 1.0, %v3925_v57 }
 0x345   :  { %3926 = vrcp.f32 %v2964_v49 }
 0x346   :  { %3928 = vrcp.f32 %v2965_v23 }
 0x34f   :  { %v3927_v58 = vpop.eup %3926 }
 0x350   :  { %v3929_v40 = vpop.eup %3928  ;;  %v2984_v51 = vmul.f32 %v3927_v58, %v2950_v24 }
 0x351   :  { %v2985_v35 = vmul.f32 %v3929_v40, %v2952_v59 }
 0x352   :  { %v2986_v31 = vadd.f32 %v2984_v51, %v2218_v56 }
 0x353   :  { %v2987_v12 = vadd.f32 %v2985_v35, %v2219_v18 }
 0x373   :  { %v2908_v9 = vpop.f32.mrb[8].mxu1 }
 0x374   :  { %v3443_v15 = vadd.f32 %v3442_v53, %v2908_v9  ;;  %v2910_v30 = vpop.f32.mrb[9].mxu1 }
 0x375   :  { %v3446_v8 = vadd.f32 %v3445_v28, %v2910_v30  ;;  %v2912_v3 = vpop.f32.mrb[10].mxu1 }
 0x376   :  { %v3317_v38 = vmul.f32 -1.442695, %v3443_v15  ;;  %v2913_v37 = vpop.f32.mrb[11].mxu1 }
 0x377   :  { %v3318_v43 = vmul.f32 -1.442695, %v3446_v8 }
 0x378   :  { %3930 = vpow2.f32 %v3317_v38 }
 0x379   :  { %3932 = vpow2.f32 %v3318_v43 }
 0x382   :  { %v3931_v61 = vpop.eup %3930 }
 0x383   :  { %v3933_v44 = vpop.eup %3932  ;;  %v2978_v29 = vadd.f32 1.0, %v3931_v61 }
 0x384   :  { %v2979_v62 = vadd.f32 1.0, %v3933_v44 }
 0x385   :  { %3934 = vrcp.f32 %v2978_v29 }
 0x386   :  { %3936 = vrcp.f32 %v2979_v62 }
 0x387   :  { %3938 = vtanh.f32 %v2986_v31 }
 0x388   :  { %3940 = vtanh.f32 %v2987_v12 }
 0x38f   :  { %v3935_v63 = vpop.eup %3934 }
 0x390   :  { %v3937_v45 = vpop.eup %3936  ;;  %v2990_v4 = vsub.f32 1.0, %v3935_v63  ;;  %v2994_v13 = vmul.f32 %v3935_v63, %v5170_v52 }
 0x391   :  { %v3939_v33 = vpop.eup %3938  ;;  %v2991_v46 = vsub.f32 1.0, %v3937_v45  ;;  %v2995_v7 = vmul.f32 %v3937_v45, %v5071_v14 }
 0x392   :  { %v3941_v50 = vpop.eup %3940  ;;  %v2992_v10 = vmul.f32 %v3939_v33, %v2990_v4 }
 0x393   :  { %v2993_v55 = vmul.f32 %v3941_v50, %v2991_v46 }
 0x394   :  { %v2996_v48 = vadd.f32 %v2994_v13, %v2992_v10 }
 0x395   :  { %v2997_v0 = vadd.f32 %v2995_v7, %v2993_v55 }
 0x396   :  { %2998 = vst [vmem:[%s5469_s9] sm:$0xff] %v2996_v48 }
 0x397   :  { %2999 = vst [vmem:[%s5469_s9 + $0x8] sm:$0xff] %v2997_v0 }

</bundles_post_ra>
